<compile_context>
chip_gen: v7x
topology: tpu7x:2x2x1
jax: 0.10.0
libtpu: 0.0.40
codegen_flags: <defaults>
</compile_context>

<pallas_src>
import functools

import jax
import jax.numpy as jnp
from jax import lax
from jax.experimental import pallas as pl
from jax.experimental.pallas import tpu as pltpu


def _sdf_mlp_kernel(xt_ref, w0_ref, w1_ref, ot_ref, *, bf16_compute):
    # Lane-dense layout: points live on the 128-lane axis.
    #   xt_ref: (input_ch, tile)     w0_ref: (hidden, input_ch)   [PyTorch (out,in)]
    #   w1_ref: (out_dim, hidden)    ot_ref: (out_dim, tile)
    xt = xt_ref[...]
    w0 = w0_ref[...]
    w1 = w1_ref[...]
    if bf16_compute:
        # bf16 operands: half the vreg/VMEM footprint, 2x MXU rate on v6e/v7x.
        h = jnp.dot(w0.astype(jnp.bfloat16), xt.astype(jnp.bfloat16),
                    preferred_element_type=jnp.float32)
        h = jnp.maximum(h, 0.0).astype(jnp.bfloat16)
        out = jnp.dot(w1.astype(jnp.bfloat16), h,
                      preferred_element_type=jnp.float32)
    else:
        # Both layers run on the MXU (vector-extended slot); the VPU only does
        # the ReLU, so the kernel stays HBM/overhead-bound instead of
        # VALU-bound.  HIGHEST keeps f32 fidelity to the PyTorch module.
        h = jnp.dot(w0, xt, preferred_element_type=jnp.float32,
                    precision=lax.Precision.HIGHEST)
        h = jnp.maximum(h, 0.0)
        out = jnp.dot(w1, h, preferred_element_type=jnp.float32,
                      precision=lax.Precision.HIGHEST)
    ot_ref[...] = out.astype(ot_ref.dtype)


def _round_up(a, b):
    return ((a + b - 1) // b) * b


def _vmem_capacity_bytes():
    try:
        return int(pltpu.get_tpu_info().vmem_capacity_bytes)
    except Exception:
        return 64 * 1024 * 1024  # conservative fallback (v7x per-TC VMEM)


@functools.partial(
    jax.jit,
    static_argnames=("tile_n", "return_geo", "out_dtype", "bf16_compute"))
def sdf_net_forward_soa(xt, w0, w1, *, tile_n=32768, return_geo=True,
                        out_dtype=None, bf16_compute=False):
    """SDFNet forward, SoA / lane-dense API (no wrapper layout passes).

    xt : (input_ch, N) f32          -- points as structure-of-arrays
    w0 : (hidden, input_ch)         -- PyTorch layer-0 weight (out, in)
    w1 : (geo_feat_dim, hidden)     -- PyTorch layer-1 weight (out, in)
    returns (geo_feat_dim, N) if return_geo else (1, N)
    """
    input_ch, n = xt.shape
    hidden = w0.shape[0]
    assert w0.shape[1] == input_ch and w1.shape[1] == hidden
    out_dtype = xt.dtype if out_dtype is None else out_dtype

    # Specialised SDF-only path: compute/write only the first output row.
    w1_used = w1 if return_geo else w1[:1, :]
    out_dim = w1_used.shape[0]

    # ---- Generation-aware tile / VMEM sizing --------------------------------
    vmem_cap = _vmem_capacity_bytes()
    # ~0.5-1 KiB of VMEM per point (double-buffered x/out + hidden scratch):
    # allow 65536-point tiles on 128 MiB v5e/v6e, cap at 32768 on 64 MiB v7x.
    tile_cap = min(tile_n, 65536 if vmem_cap >= (96 << 20) else 32768)
    # >= 2 grid steps for mid/large N so ("parallel",) keeps both v7x TCs busy.
    min_steps = 2 if n > 4096 else 1
    tile = min(tile_cap, _round_up(pl.cdiv(n, min_steps), 512))
    grid = (pl.cdiv(n, tile),)   # ragged tail handled by Pallas block clipping
    vmem_limit = min(64 << 20, (vmem_cap // 4) * 3)

    kernel = functools.partial(_sdf_mlp_kernel, bf16_compute=bf16_compute)

    return pl.pallas_call(
        kernel,
        out_shape=jax.ShapeDtypeStruct((out_dim, n), out_dtype),
        grid_spec=pltpu.PrefetchScalarGridSpec(
            num_scalar_prefetch=0,
            grid=grid,
            in_specs=[
                # Points: lane-dense (N on the 128-lane axis).  If DMA latency
                # ever shows up for tiny tiles, add pipeline_mode=pl.Buffered(3)
                # on this spec only.
                pl.BlockSpec((input_ch, tile), lambda i: (0, i)),
                # Weights: constant index map -> resident across grid steps.
                pl.BlockSpec((hidden, input_ch), lambda i: (0, 0)),
                pl.BlockSpec((out_dim, hidden), lambda i: (0, 0)),
            ],
            out_specs=pl.BlockSpec((out_dim, tile), lambda i: (0, i)),
        ),
        compiler_params=pltpu.CompilerParams(
            dimension_semantics=("parallel",),   # v7x: shard steps over 2 TCs
            vmem_limit_bytes=vmem_limit,
        ),
    )(xt, w0, w1_used)


def sdf_net_forward(x, w0, w1, **kwargs):
    """Module-faithful AoS signature: x (N, input_ch) -> (N, out_dim).

    NOTE: the two transposes here are extra full HBM passes; prefer
    sdf_net_forward_soa in performance-critical paths.
    """
    return sdf_net_forward_soa(x.T, w0, w1, **kwargs).T


def init_params(key, input_ch=3, geo_feat_dim=16, hidden_dim=64):
    """nn.Linear-style uniform(-1/sqrt(fan_in), +) init, PyTorch (out,in) layout."""
    k0, k1 = jax.random.split(key)
    b0 = 1.0 / jnp.sqrt(input_ch)
    b1 = 1.0 / jnp.sqrt(hidden_dim)
    w0 = jax.random.uniform(k0, (hidden_dim, input_ch), jnp.float32, -b0, b0)
    w1 = jax.random.uniform(k1, (geo_feat_dim, hidden_dim), jnp.float32, -b1, b1)
    return w0, w1


if __name__ == "__main__":
    input_ch, geo_feat_dim, hidden_dim = 3, 16, 64

    key = jax.random.PRNGKey(0)
    kx1, kx2, kp = jax.random.split(key, 3)
    w0, w1 = init_params(kp, input_ch, geo_feat_dim, hidden_dim)

    def torch_ref(x):
        # PyTorch semantics: relu(x @ W0.T) @ W1.T with (out,in) weights.
        return jnp.maximum(x @ w0.T, 0.0) @ w1.T

    # ---- single-step grid, ragged N (not a multiple of 128) -----------------
    n1 = 1000
    x1 = jax.random.normal(kx1, (n1, input_ch), jnp.float32)
    ref1 = torch_ref(x1)

    out1 = jax.block_until_ready(sdf_net_forward_soa(x1.T, w0, w1, return_geo=True))
    assert out1.shape == (geo_feat_dim, n1)
    assert jnp.allclose(out1.T, ref1, atol=1e-3, rtol=1e-3)

    sdf1 = jax.block_until_ready(sdf_net_forward_soa(x1.T, w0, w1, return_geo=False))
    assert sdf1.shape == (1, n1)
    assert jnp.allclose(sdf1.T, ref1[:, :1], atol=1e-3, rtol=1e-3)

    # AoS compatibility wrapper (module-faithful (N,3) -> (N,16) signature).
    out1_aos = jax.block_until_ready(sdf_net_forward(x1, w0, w1))
    assert out1_aos.shape == (n1, geo_feat_dim)
    assert jnp.allclose(out1_aos, ref1, atol=1e-3, rtol=1e-3)

    # ---- multi-step grid (>=2 steps) + ragged tail + bf16 fast path ---------
    n2 = 5000
    x2 = jax.random.normal(kx2, (n2, input_ch), jnp.float32)
    ref2 = torch_ref(x2)

    out2 = jax.block_until_ready(sdf_net_forward_soa(x2.T, w0, w1, return_geo=True))
    assert out2.shape == (geo_feat_dim, n2)
    assert jnp.allclose(out2.T, ref2, atol=1e-3, rtol=1e-3)

    out2_bf16 = jax.block_until_ready(
        sdf_net_forward_soa(x2.T, w0, w1, return_geo=True,
                            out_dtype=jnp.bfloat16, bf16_compute=True))
    assert out2_bf16.dtype == jnp.bfloat16
    assert jnp.allclose(out2_bf16.T.astype(jnp.float32), ref2, atol=5e-2, rtol=5e-2)

    print("KERNEL_OK")
</pallas_src>

<mosaic_0001>
module attributes {stable_mosaic.version = 11 : i64} {
  func.func @_sdf_mlp_kernel(%arg0: i32, %arg1: memref<3x1024xf32, #tpu.memory_space<vmem>>, %arg2: memref<64x3xf32, #tpu.memory_space<vmem>>, %arg3: memref<16x64xf32, #tpu.memory_space<vmem>>, %arg4: memref<16x1024xf32, #tpu.memory_space<vmem>>) attributes {dimension_semantics = [#tpu.dimension_semantics<parallel>], iteration_bounds = array<i64: 1>, scalar_prefetch = 0 : i64, scratch_operands = 0 : i64, tpu.core_type = #tpu.core_type<tc>, window_params = [{transform_indices = @transform_0, window_bounds = array<i64: 3, 1024>}, {pipeline_mode = #tpu.pipeline_mode<synchronous>, transform_indices = @transform_1, window_bounds = array<i64: 64, 3>}, {pipeline_mode = #tpu.pipeline_mode<synchronous>, transform_indices = @transform_2, window_bounds = array<i64: 16, 64>}, {transform_indices = @transform_3, window_bounds = array<i64: 16, 1024>}]} {
    %c0 = arith.constant 0 : index
    %c0_0 = arith.constant 0 : index
    %0 = vector.load %arg1[%c0, %c0_0] : memref<3x1024xf32, #tpu.memory_space<vmem>>, vector<3x1024xf32>
    %c0_1 = arith.constant 0 : index
    %c0_2 = arith.constant 0 : index
    %1 = vector.load %arg2[%c0_1, %c0_2] : memref<64x3xf32, #tpu.memory_space<vmem>>, vector<64x3xf32>
    %c0_3 = arith.constant 0 : index
    %c0_4 = arith.constant 0 : index
    %2 = vector.load %arg3[%c0_3, %c0_4] : memref<16x64xf32, #tpu.memory_space<vmem>>, vector<16x64xf32>
    %cst = arith.constant dense<0.000000e+00> : vector<64x1024xf32>
    %3 = tpu.matmul %1, %0, %cst {dimension_numbers = #tpu.dot_dimension_numbers<[1], [0], [0], [1], [0, 0, 1, 1], [], []>, precision = #tpu.contract_precision<fp32>} : vector<64x3xf32>, vector<3x1024xf32>, vector<64x1024xf32> -> vector<64x1024xf32>
    %cst_5 = arith.constant 0.000000e+00 : f32
    %4 = vector.broadcast %cst_5 : f32 to vector<64x1024xf32>
    %5 = arith.maximumf %3, %4 : vector<64x1024xf32>
    %cst_6 = arith.constant dense<0.000000e+00> : vector<16x1024xf32>
    %6 = tpu.matmul %2, %5, %cst_6 {dimension_numbers = #tpu.dot_dimension_numbers<[1], [0], [0], [1], [0, 0, 1, 1], [], []>, precision = #tpu.contract_precision<fp32>} : vector<16x64xf32>, vector<64x1024xf32>, vector<16x1024xf32> -> vector<16x1024xf32>
    %c0_7 = arith.constant 0 : index
    %c0_8 = arith.constant 0 : index
    %7 = vector.load %arg4[%c0_7, %c0_8] : memref<16x1024xf32, #tpu.memory_space<vmem>>, vector<16x1024xf32>
    tpu.vector_store %arg4[%c0_7, %c0_8], %6 {strides = array<i32>} : memref<16x1024xf32, #tpu.memory_space<vmem>>, vector<16x1024xf32>,
    return
  }
  func.func @transform_0(%arg0: i32) -> (i32, i32) {
    %c0_i32 = arith.constant 0 : i32
    %c0_i32_0 = arith.constant 0 : i32
    return %c0_i32, %arg0 : i32, i32
  }
  func.func @transform_1(%arg0: i32) -> (i32, i32) {
    %c0_i32 = arith.constant 0 : i32
    %c0_i32_0 = arith.constant 0 : i32
    %c0_i32_1 = arith.constant 0 : i32
    return %c0_i32, %c0_i32_0 : i32, i32
  }
  func.func @transform_2(%arg0: i32) -> (i32, i32) {
    %c0_i32 = arith.constant 0 : i32
    %c0_i32_0 = arith.constant 0 : i32
    %c0_i32_1 = arith.constant 0 : i32
    return %c0_i32, %c0_i32_0 : i32, i32
  }
  func.func @transform_3(%arg0: i32) -> (i32, i32) {
    %c0_i32 = arith.constant 0 : i32
    %c0_i32_0 = arith.constant 0 : i32
    return %c0_i32, %arg0 : i32, i32
  }
}

</mosaic_0001>

<bundles_post_ra>
// kernel: sdf_net_forward_soa.1
= control target key start
LH: loop header
LB: loop body
LE: loop exit
PB: predicated region body
PF: predicated region fallthrough
CT: control target
= control target key end

     0   :  { %vm62_vm0 = vcmask 1042432   ;;  %v8994_v5 = vmov 0.0   ;;  %vm37_vm1 = vcmask 23552   ;;  %s8984_s0 = inlined_call_operand.vmem [shape: f32[3,1000], index: 0, kind: input, shape index: {}]   ;;  %s8985_s1 = inlined_call_operand.vmem [shape: f32[64,3], index: 1, kind: input, shape index: {}]   ;;  %s8986_s2 = inlined_call_operand.vmem [shape: f32[16,64], index: 2, kind: input, shape index: {}]   ;;  %s8987_s3 = inlined_call_operand.hbm [shape: f32[16,1000], index: 3, kind: output, shape index: {}]  }
   0x1   :  { %v15_v0 = vld [vmem:[%s8984_s0] sm:$0x77]  ;;  %v16_v1 = vld [vmem:[%s8984_s0 + $0x8] sm:$0x77]  ;;  %145 = vmatprep.mubr.f32.mxu0 %v8994_v5  ;;  %953 = vmatprep.mubr.f32.mxu1 %v8994_v5  ;;  %v21_v11 = vld [vmem:[%s8985_s1 + $0x10] sm:$0xff] }
   0x2   :  { %v33_v2 = vcombine.high %v15_v0, %v15_v0  ;;  %v34_v3 = vcombine.high %v16_v1, %v16_v1  ;;  %v63_v4 = vsel %vm62_vm0, %v15_v0, 0  ;;  %v67_v6 = vsel %vm62_vm0, %v16_v1, 0  ;;  %v19_v7 = vld [vmem:[%s8985_s1] sm:$0xff]  ;;  %v20_v8 = vld [vmem:[%s8985_s1 + $0x8] sm:$0xff]  ;;  %v22_v12 = vld [vmem:[%s8985_s1 + $0x18] sm:$0xff] }
   0x3   :  { %v7054_v9 = vand.u32 4294901760, %v63_v4  ;;  %v7056_v10 = vand.u32 4294901760, %v67_v6  ;;  %v39_v15 = vsel %vm37_vm1, %v19_v7, 0  ;;  %v42_v16 = vsel %vm37_vm1, %v20_v8, 0 }
   0x4   :  { %v65_v13 = vsel %vm62_vm0, %v33_v2, 0  ;;  %v69_v14 = vsel %vm62_vm0, %v34_v3, 0 }
   0x5   :  { %v7068_v17 = vand.u32 4294901760, %v65_v13  ;;  %v7070_v18 = vand.u32 4294901760, %v69_v14  ;;  %v7073_v19 = vsub.f32 %v63_v4, %v7054_v9  ;;  %v7076_v20 = vsub.f32 %v67_v6, %v7056_v10 }
   0x6   :  { %8 = vsyncpa [#allocation3], 0  ;;  %v7078_v21 = vand.u32 4294901760, %v39_v15  ;;  %v7080_v22 = vand.u32 4294901760, %v42_v16  ;;  %v45_v23 = vsel %vm37_vm1, %v21_v11, 0  ;;  %v48_v24 = vsel %vm37_vm1, %v22_v12, 0 }
   0x7   :  { %80 = vmatprep.subr.mxu0 %v7068_v17  ;;  %888 = vmatprep.subr.mxu1 %v7070_v18  ;;  %v7087_v25 = vsub.f32 %v65_v13, %v7068_v17  ;;  %v7090_v26 = vsub.f32 %v69_v14, %v7070_v18  ;;  %v242_v27 = vand.u32 4294901760, %v7073_v19  ;;  %v1050_v28 = vand.u32 4294901760, %v7076_v20  ;;  %v23_v40 = vld [vmem:[%s8985_s1 + $0x20] sm:$0xff]  ;;  %v24_v41 = vld [vmem:[%s8985_s1 + $0x28] sm:$0xff]  ;;  %v25_v55 = vld [vmem:[%s8985_s1 + $0x30] sm:$0xff] }
   0x8   :  { %82 = vmatpush1.msra.mxu0 %v7054_v9  ;;  %890 = vmatpush1.msra.mxu1 %v7056_v10  ;;  %v7097_v29 = vsub.f32 %v39_v15, %v7078_v21  ;;  %v7100_v30 = vsub.f32 %v42_v16, %v7080_v22  ;;  %v7102_v31 = vand.u32 4294901760, %v45_v23  ;;  %v7104_v32 = vand.u32 4294901760, %v48_v24  ;;  %v26_v63 = vld [vmem:[%s8985_s1 + $0x38] sm:$0xff] }
   0x9   :  { %v236_v33 = vand.u32 4294901760, %v7087_v25  ;;  %v1044_v34 = vand.u32 4294901760, %v7090_v26  ;;  %v243_v35 = vsub.f32 %v7073_v19, %v242_v27  ;;  %v1051_v37 = vsub.f32 %v7076_v20, %v1050_v28 }
   0xa   :  { %v7112_v36 = vand.u32 4294901760, %v7097_v29  ;;  %v7118_v38 = vand.u32 4294901760, %v7100_v30  ;;  %v7121_v39 = vsub.f32 %v45_v23, %v7102_v31  ;;  %v7136_v44 = vsub.f32 %v48_v24, %v7104_v32 }
   0xb   :  { %v237_v42 = vsub.f32 %v7087_v25, %v236_v33  ;;  %v1045_v43 = vsub.f32 %v7090_v26, %v1044_v34  ;;  %v244_v46 = vand.u32 4294901760, %v243_v35  ;;  %v51_v51 = vsel %vm37_vm1, %v23_v40, 0 }
   0xc   :  { %v149_v45 = vsub.f32 %v7097_v29, %v7112_v36  ;;  %v160_v47 = vsub.f32 %v7100_v30, %v7118_v38  ;;  %v7143_v48 = vand.u32 4294901760, %v7121_v39  ;;  %v54_v52 = vsel %vm37_vm1, %v24_v41, 0 }
   0xd   :  { %v238_v49 = vand.u32 4294901760, %v237_v42  ;;  %v1046_v50 = vand.u32 4294901760, %v1045_v43  ;;  %v1052_v54 = vand.u32 4294901760, %v1051_v37  ;;  %v7153_v56 = vand.u32 4294901760, %v7136_v44 }
   0xe   :  { %v7147_v53 = vand.u32 4294901760, %v149_v45  ;;  %v7155_v57 = vand.u32 4294901760, %v51_v51  ;;  %v7159_v58 = vand.u32 4294901760, %v160_v47  ;;  %v171_v59 = vsub.f32 %v7121_v39, %v7143_v48 }
   0xf   :  { %239 = vmatprep.subr.mxu0 %v238_v49  ;;  %1047 = vmatprep.subr.mxu1 %v1046_v50  ;;  %v7163_v60 = vand.u32 4294901760, %v54_v52  ;;  %v57_v62 = vsel %vm37_vm1, %v25_v55, 0  ;;  %v182_v0 = vsub.f32 %v7136_v44, %v7153_v56  ;;  %v60_v6 = vsel %vm37_vm1, %v26_v63, 0 }
  0x10   :  { %151 = vmatmul.mubr.f32.vlgmr.msra.gmra.mrb[0].mxu0 %v7147_v53  ;;  %959 = vmatmul.mubr.f32.vlgmr.msra.gmra.mrb[0].mxu1 %v7147_v53  ;;  %v7167_v61 = vsub.f32 %v51_v51, %v7155_v57  ;;  %v7180_v1 = vand.u32 4294901760, %v171_v59  ;;  %v7188_v4 = vand.u32 4294901760, %v57_v62  ;;  %v7205_v13 = vand.u32 4294901760, %v60_v6 }
  0x11   :  { %156 = vmatprep.mubr.f32.mxu0 %v8994_v5  ;;  %245 = vmatpush1.msra.mxu0 %v244_v46  ;;  %v7186_v3 = vsub.f32 %v54_v52, %v7163_v60  ;;  %v7193_v7 = vand.u32 4294901760, %v182_v0  ;;  %vm3375_vm2 = vcmask 523264  }
  0x12   :  { %964 = vmatprep.mubr.f32.mxu1 %v8994_v5  ;;  %1053 = vmatpush1.msra.mxu1 %v1052_v54  ;;  %v7183_v2 = vand.u32 4294901760, %v7167_v61  ;;  %v7203_v12 = vsub.f32 %v57_v62, %v7188_v4  ;;  %v7219_v23 = vsub.f32 %v60_v6, %v7205_v13 }
  0x13   :  { %367 = vmatprep.subr.mxu0 %v7087_v25  ;;  %1175 = vmatprep.subr.mxu1 %v7090_v26  ;;  %v7200_v11 = vand.u32 4294901760, %v7186_v3 }
  0x14   :  { %162 = vmatmul.mubr.f32.gmra.mrb[2].mxu0 %v7159_v58  ;;  %970 = vmatmul.mubr.f32.gmra.mrb[2].mxu1 %v7159_v58  ;;  %v193_v8 = vsub.f32 %v7167_v61, %v7183_v2  ;;  %v7216_v16 = vand.u32 4294901760, %v7203_v12  ;;  %v7230_v37 = vand.u32 4294901760, %v7219_v23 }
  0x15   :  { %167 = vmatprep.mubr.f32.mxu0 %v8994_v5  ;;  %975 = vmatprep.mubr.f32.mxu1 %v8994_v5  ;;  %v204_v15 = vsub.f32 %v7186_v3, %v7200_v11 }
  0x16   :  { %v7211_v14 = vand.u32 4294901760, %v193_v8  ;;  %v215_v35 = vsub.f32 %v7203_v12, %v7216_v16  ;;  %v226_v41 = vsub.f32 %v7219_v23, %v7230_v37 }
  0x17   :  { %v7225_v24 = vand.u32 4294901760, %v204_v15 }
  0x18   :  { %173 = vmatmul.mubr.f32.gmra.mrb[4].mxu0 %v7180_v1  ;;  %981 = vmatmul.mubr.f32.gmra.mrb[4].mxu1 %v7180_v1  ;;  %v7236_v40 = vand.u32 4294901760, %v215_v35  ;;  %v7244_v42 = vand.u32 4294901760, %v226_v41 }
  0x19   :  { %178 = vmatprep.mubr.f32.mxu0 %v8994_v5  ;;  %986 = vmatprep.mubr.f32.mxu1 %v8994_v5 }
  0x1c   :  { %184 = vmatmul.mubr.f32.gmra.mrb[6].mxu0 %v7193_v7  ;;  %992 = vmatmul.mubr.f32.gmra.mrb[6].mxu1 %v7193_v7 }
  0x1d   :  { %189 = vmatprep.mubr.f32.mxu0 %v8994_v5  ;;  %997 = vmatprep.mubr.f32.mxu1 %v8994_v5 }
  0x20   :  { %195 = vmatmul.mubr.f32.gmra.mrb[8].mxu0 %v7211_v14  ;;  %1003 = vmatmul.mubr.f32.gmra.mrb[8].mxu1 %v7211_v14 }
  0x21   :  { %200 = vmatprep.mubr.f32.mxu0 %v8994_v5  ;;  %1008 = vmatprep.mubr.f32.mxu1 %v8994_v5 }
  0x24   :  { %206 = vmatmul.mubr.f32.gmra.mrb[10].mxu0 %v7225_v24  ;;  %1014 = vmatmul.mubr.f32.gmra.mrb[10].mxu1 %v7225_v24 }
  0x25   :  { %211 = vmatprep.mubr.f32.mxu0 %v8994_v5  ;;  %1019 = vmatprep.mubr.f32.mxu1 %v8994_v5 }
  0x28   :  { %217 = vmatmul.mubr.f32.gmra.mrb[12].mxu0 %v7236_v40  ;;  %1025 = vmatmul.mubr.f32.gmra.mrb[12].mxu1 %v7236_v40 }
  0x29   :  { %222 = vmatprep.mubr.f32.mxu0 %v8994_v5  ;;  %1030 = vmatprep.mubr.f32.mxu1 %v8994_v5 }
  0x2c   :  { %228 = vmatmul.mubr.f32.gmra.mrb[14].mxu0 %v7244_v42  ;;  %1036 = vmatmul.mubr.f32.gmra.mrb[14].mxu1 %v7244_v42 }
  0x2d   :  { %308 = vmatprep.mubr.f32.mxu0 %v8994_v5  ;;  %1116 = vmatprep.mubr.f32.mxu1 %v8994_v5 }
  0x30   :  { %310 = vmatmul.mubr.f32.vlgmr.msra.gmra.mrb[0].mxu0 %v7078_v21  ;;  %1118 = vmatmul.mubr.f32.vlgmr.msra.gmra.mrb[0].mxu1 %v7078_v21 }
  0x31   :  { %315 = vmatprep.mubr.f32.mxu0 %v8994_v5  ;;  %370 = vmatpush1.msra.mxu0 %v7073_v19 }
  0x32   :  { %1123 = vmatprep.mubr.f32.mxu1 %v8994_v5  ;;  %1178 = vmatpush1.msra.mxu1 %v7076_v20 }
  0x33   :  { %499 = vmatprep.subr.mxu0 %v7068_v17  ;;  %1307 = vmatprep.subr.mxu1 %v7070_v18 }
  0x34   :  { %317 = vmatmul.mubr.f32.gmra.mrb[2].mxu0 %v7080_v22  ;;  %1125 = vmatmul.mubr.f32.gmra.mrb[2].mxu1 %v7080_v22 }
  0x35   :  { %322 = vmatprep.mubr.f32.mxu0 %v8994_v5  ;;  %1130 = vmatprep.mubr.f32.mxu1 %v8994_v5 }
  0x38   :  { %324 = vmatmul.mubr.f32.gmra.mrb[4].mxu0 %v7102_v31  ;;  %1132 = vmatmul.mubr.f32.gmra.mrb[4].mxu1 %v7102_v31 }
  0x39   :  { %329 = vmatprep.mubr.f32.mxu0 %v8994_v5  ;;  %1137 = vmatprep.mubr.f32.mxu1 %v8994_v5 }
  0x3c   :  { %331 = vmatmul.mubr.f32.gmra.mrb[6].mxu0 %v7104_v32  ;;  %1139 = vmatmul.mubr.f32.gmra.mrb[6].mxu1 %v7104_v32 }
  0x3d   :  { %336 = vmatprep.mubr.f32.mxu0 %v8994_v5  ;;  %1144 = vmatprep.mubr.f32.mxu1 %v8994_v5 }
  0x40   :  { %338 = vmatmul.mubr.f32.gmra.mrb[8].mxu0 %v7155_v57  ;;  %1146 = vmatmul.mubr.f32.gmra.mrb[8].mxu1 %v7155_v57 }
  0x41   :  { %343 = vmatprep.mubr.f32.mxu0 %v8994_v5  ;;  %1151 = vmatprep.mubr.f32.mxu1 %v8994_v5 }
  0x44   :  { %345 = vmatmul.mubr.f32.gmra.mrb[10].mxu0 %v7163_v60  ;;  %1153 = vmatmul.mubr.f32.gmra.mrb[10].mxu1 %v7163_v60 }
  0x45   :  { %350 = vmatprep.mubr.f32.mxu0 %v8994_v5  ;;  %1158 = vmatprep.mubr.f32.mxu1 %v8994_v5 }
  0x48   :  { %352 = vmatmul.mubr.f32.gmra.mrb[12].mxu0 %v7188_v4  ;;  %1160 = vmatmul.mubr.f32.gmra.mrb[12].mxu1 %v7188_v4 }
  0x49   :  { %357 = vmatprep.mubr.f32.mxu0 %v8994_v5  ;;  %1165 = vmatprep.mubr.f32.mxu1 %v8994_v5 }
  0x4c   :  { %359 = vmatmul.mubr.f32.gmra.mrb[14].mxu0 %v7205_v13  ;;  %1167 = vmatmul.mubr.f32.gmra.mrb[14].mxu1 %v7205_v13 }
  0x4d   :  { %433 = vmatprep.mubr.f32.mxu0 %v8994_v5  ;;  %1241 = vmatprep.mubr.f32.mxu1 %v8994_v5 }
  0x50   :  { %436 = vmatmul.mubr.f32.vlgmr.msra.gmra.mrb[0].mxu0 %v7097_v29  ;;  %1244 = vmatmul.mubr.f32.vlgmr.msra.gmra.mrb[0].mxu1 %v7097_v29 }
  0x51   :  { %441 = vmatprep.mubr.f32.mxu0 %v8994_v5  ;;  %501 = vmatpush1.msra.mxu0 %v7054_v9 }
  0x52   :  { %1249 = vmatprep.mubr.f32.mxu1 %v8994_v5  ;;  %1309 = vmatpush1.msra.mxu1 %v7056_v10 }
  0x53   :  { %640 = vmatprep.subr.mxu0 %v236_v33  ;;  %1448 = vmatprep.subr.mxu1 %v1044_v34 }
  0x54   :  { %444 = vmatmul.mubr.f32.gmra.mrb[2].mxu0 %v7100_v30  ;;  %1252 = vmatmul.mubr.f32.gmra.mrb[2].mxu1 %v7100_v30 }
  0x55   :  { %449 = vmatprep.mubr.f32.mxu0 %v8994_v5  ;;  %1257 = vmatprep.mubr.f32.mxu1 %v8994_v5 }
  0x58   :  { %452 = vmatmul.mubr.f32.gmra.mrb[4].mxu0 %v7121_v39  ;;  %1260 = vmatmul.mubr.f32.gmra.mrb[4].mxu1 %v7121_v39 }
  0x59   :  { %457 = vmatprep.mubr.f32.mxu0 %v8994_v5  ;;  %1265 = vmatprep.mubr.f32.mxu1 %v8994_v5 }
  0x5c   :  { %460 = vmatmul.mubr.f32.gmra.mrb[6].mxu0 %v7136_v44  ;;  %1268 = vmatmul.mubr.f32.gmra.mrb[6].mxu1 %v7136_v44 }
  0x5d   :  { %465 = vmatprep.mubr.f32.mxu0 %v8994_v5  ;;  %1273 = vmatprep.mubr.f32.mxu1 %v8994_v5 }
  0x60   :  { %468 = vmatmul.mubr.f32.gmra.mrb[8].mxu0 %v7167_v61  ;;  %1276 = vmatmul.mubr.f32.gmra.mrb[8].mxu1 %v7167_v61 }
  0x61   :  { %473 = vmatprep.mubr.f32.mxu0 %v8994_v5  ;;  %1281 = vmatprep.mubr.f32.mxu1 %v8994_v5 }
  0x64   :  { %476 = vmatmul.mubr.f32.gmra.mrb[10].mxu0 %v7186_v3  ;;  %1284 = vmatmul.mubr.f32.gmra.mrb[10].mxu1 %v7186_v3 }
  0x65   :  { %481 = vmatprep.mubr.f32.mxu0 %v8994_v5  ;;  %1289 = vmatprep.mubr.f32.mxu1 %v8994_v5 }
  0x68   :  { %484 = vmatmul.mubr.f32.gmra.mrb[12].mxu0 %v7203_v12  ;;  %1292 = vmatmul.mubr.f32.gmra.mrb[12].mxu1 %v7203_v12 }
  0x69   :  { %489 = vmatprep.mubr.f32.mxu0 %v8994_v5  ;;  %1297 = vmatprep.mubr.f32.mxu1 %v8994_v5 }
  0x6c   :  { %492 = vmatmul.mubr.f32.gmra.mrb[14].mxu0 %v7219_v23  ;;  %1300 = vmatmul.mubr.f32.gmra.mrb[14].mxu1 %v7219_v23 }
  0x6d   :  { %564 = vmatprep.mubr.f32.mxu0 %v8994_v5  ;;  %1372 = vmatprep.mubr.f32.mxu1 %v8994_v5 }
  0x70   :  { %568 = vmatmul.mubr.f32.vlgmr.msra.gmra.mrb[0].mxu0 %v7112_v36  ;;  %1376 = vmatmul.mubr.f32.vlgmr.msra.gmra.mrb[0].mxu1 %v7112_v36 }
  0x71   :  { %573 = vmatprep.mubr.f32.mxu0 %v8994_v5  ;;  %644 = vmatpush1.msra.mxu0 %v242_v27 }
  0x72   :  { %1381 = vmatprep.mubr.f32.mxu1 %v8994_v5  ;;  %1452 = vmatpush1.msra.mxu1 %v1050_v28 }
  0x73   :  { %765 = vmatprep.subr.mxu0 %v7068_v17  ;;  %1573 = vmatprep.subr.mxu1 %v7070_v18  ;;  %v17_v17 = vld [vmem:[%s8984_s0 + $0x10] sm:$0x77]  ;;  %v18_v18 = vld [vmem:[%s8984_s0 + $0x18] sm:$0x77] }
  0x74   :  { %577 = vmatmul.mubr.f32.gmra.mrb[2].mxu0 %v7118_v38  ;;  %1385 = vmatmul.mubr.f32.gmra.mrb[2].mxu1 %v7118_v38  ;;  %v35_v19 = vcombine.high %v17_v17, %v17_v17  ;;  %v36_v20 = vcombine.high %v18_v18, %v18_v18  ;;  %v71_v43 = vsel %vm62_vm0, %v17_v17, 0  ;;  %v75_v45 = vsel %vm62_vm0, %v18_v18, 0 }
  0x75   :  { %582 = vmatprep.mubr.f32.mxu0 %v8994_v5  ;;  %1390 = vmatprep.mubr.f32.mxu1 %v8994_v5  ;;  %v7428_v49 = vand.u32 4294901760, %v71_v43  ;;  %v7430_v50 = vand.u32 4294901760, %v75_v45 }
  0x76   :  { %v73_v25 = vsel %vm62_vm0, %v35_v19, 0  ;;  %v77_v26 = vsel %vm62_vm0, %v36_v20, 0 }
  0x77   :  { %v7372_v27 = vand.u32 4294901760, %v73_v25  ;;  %v7374_v28 = vand.u32 4294901760, %v77_v26  ;;  %v7453_v54 = vsub.f32 %v71_v43, %v7428_v49  ;;  %v7458_v55 = vsub.f32 %v75_v45, %v7430_v50 }
  0x78   :  { %586 = vmatmul.mubr.f32.gmra.mrb[4].mxu0 %v7143_v48  ;;  %1394 = vmatmul.mubr.f32.gmra.mrb[4].mxu1 %v7143_v48 }
  0x79   :  { %591 = vmatprep.mubr.f32.mxu0 %v8994_v5  ;;  %1399 = vmatprep.mubr.f32.mxu1 %v8994_v5  ;;  %v1858_v59 = vand.u32 4294901760, %v7453_v54  ;;  %v2666_v62 = vand.u32 4294901760, %v7458_v55 }
  0x7b   :  { %v1859_v63 = vsub.f32 %v7453_v54, %v1858_v59  ;;  %v2667_v0 = vsub.f32 %v7458_v55, %v2666_v62 }
  0x7c   :  { %595 = vmatmul.mubr.f32.gmra.mrb[6].mxu0 %v7153_v56  ;;  %1403 = vmatmul.mubr.f32.gmra.mrb[6].mxu1 %v7153_v56 }
  0x7d   :  { %600 = vmatprep.mubr.f32.mxu0 %v8994_v5  ;;  %1408 = vmatprep.mubr.f32.mxu1 %v8994_v5  ;;  %v1860_v6 = vand.u32 4294901760, %v1859_v63  ;;  %v2668_v8 = vand.u32 4294901760, %v2667_v0 }
  0x80   :  { %604 = vmatmul.mubr.f32.gmra.mrb[8].mxu0 %v7183_v2  ;;  %1412 = vmatmul.mubr.f32.gmra.mrb[8].mxu1 %v7183_v2 }
  0x81   :  { %609 = vmatprep.mubr.f32.mxu0 %v8994_v5  ;;  %1417 = vmatprep.mubr.f32.mxu1 %v8994_v5 }
  0x84   :  { %613 = vmatmul.mubr.f32.gmra.mrb[10].mxu0 %v7200_v11  ;;  %1421 = vmatmul.mubr.f32.gmra.mrb[10].mxu1 %v7200_v11 }
  0x85   :  { %618 = vmatprep.mubr.f32.mxu0 %v8994_v5  ;;  %1426 = vmatprep.mubr.f32.mxu1 %v8994_v5 }
  0x88   :  { %622 = vmatmul.mubr.f32.gmra.mrb[12].mxu0 %v7216_v16  ;;  %1430 = vmatmul.mubr.f32.gmra.mrb[12].mxu1 %v7216_v16 }
  0x89   :  { %627 = vmatprep.mubr.f32.mxu0 %v8994_v5  ;;  %1435 = vmatprep.mubr.f32.mxu1 %v8994_v5 }
  0x8c   :  { %631 = vmatmul.mubr.f32.gmra.mrb[14].mxu0 %v7230_v37  ;;  %1439 = vmatmul.mubr.f32.gmra.mrb[14].mxu1 %v7230_v37 }
  0x8d   :  { %707 = vmatprep.mubr.f32.mxu0 %v8994_v5  ;;  %1515 = vmatprep.mubr.f32.mxu1 %v8994_v5 }
  0x90   :  { %709 = vmatmul.mubr.f32.vlgmr.msra.gmra.mrb[0].mxu0 %v7078_v21  ;;  %1517 = vmatmul.mubr.f32.vlgmr.msra.gmra.mrb[0].mxu1 %v7078_v21 }
  0x91   :  { %714 = vmatprep.mubr.f32.mxu0 %v8994_v5  ;;  %767 = vmatpush1.msra.mxu0 %v7054_v9  ;;  %v7401_v9 = vsub.f32 %v73_v25, %v7372_v27 }
  0x92   :  { %1522 = vmatprep.mubr.f32.mxu1 %v8994_v5  ;;  %1575 = vmatpush1.msra.mxu1 %v7056_v10  ;;  %v7404_v10 = vsub.f32 %v77_v26, %v7374_v28 }
  0x93   :  { %1696 = vmatprep.subr.mxu0 %v7372_v27  ;;  %2504 = vmatprep.subr.mxu1 %v7374_v28  ;;  %v1852_v33 = vand.u32 4294901760, %v7401_v9 }
  0x94   :  { %716 = vmatmul.mubr.f32.gmra.mrb[2].mxu0 %v7080_v22  ;;  %1524 = vmatmul.mubr.f32.gmra.mrb[2].mxu1 %v7080_v22  ;;  %v2660_v34 = vand.u32 4294901760, %v7404_v10 }
  0x95   :  { %721 = vmatprep.mubr.f32.mxu0 %v8994_v5  ;;  %1529 = vmatprep.mubr.f32.mxu1 %v8994_v5  ;;  %v1853_v46 = vsub.f32 %v7401_v9, %v1852_v33 }
  0x96   :  { %v2661_v47 = vsub.f32 %v7404_v10, %v2660_v34 }
  0x97   :  { %v1854_v51 = vand.u32 4294901760, %v1853_v46 }
  0x98   :  { %723 = vmatmul.mubr.f32.gmra.mrb[4].mxu0 %v7102_v31  ;;  %1531 = vmatmul.mubr.f32.gmra.mrb[4].mxu1 %v7102_v31  ;;  %v2662_v52 = vand.u32 4294901760, %v2661_v47 }
  0x99   :  { %728 = vmatprep.mubr.f32.mxu0 %v8994_v5  ;;  %1536 = vmatprep.mubr.f32.mxu1 %v8994_v5 }
  0x9c   :  { %730 = vmatmul.mubr.f32.gmra.mrb[6].mxu0 %v7104_v32  ;;  %1538 = vmatmul.mubr.f32.gmra.mrb[6].mxu1 %v7104_v32 }
  0x9d   :  { %735 = vmatprep.mubr.f32.mxu0 %v8994_v5  ;;  %1543 = vmatprep.mubr.f32.mxu1 %v8994_v5 }
  0xa0   :  { %737 = vmatmul.mubr.f32.gmra.mrb[8].mxu0 %v7155_v57  ;;  %1545 = vmatmul.mubr.f32.gmra.mrb[8].mxu1 %v7155_v57 }
  0xa1   :  { %742 = vmatprep.mubr.f32.mxu0 %v8994_v5  ;;  %1550 = vmatprep.mubr.f32.mxu1 %v8994_v5 }
  0xa4   :  { %744 = vmatmul.mubr.f32.gmra.mrb[10].mxu0 %v7163_v60  ;;  %1552 = vmatmul.mubr.f32.gmra.mrb[10].mxu1 %v7163_v60 }
  0xa5   :  { %749 = vmatprep.mubr.f32.mxu0 %v8994_v5  ;;  %1557 = vmatprep.mubr.f32.mxu1 %v8994_v5 }
  0xa8   :  { %751 = vmatmul.mubr.f32.gmra.mrb[12].mxu0 %v7188_v4  ;;  %1559 = vmatmul.mubr.f32.gmra.mrb[12].mxu1 %v7188_v4 }
  0xa9   :  { %756 = vmatprep.mubr.f32.mxu0 %v8994_v5  ;;  %1564 = vmatprep.mubr.f32.mxu1 %v8994_v5 }
  0xac   :  { %758 = vmatmul.mubr.f32.gmra.mrb[14].mxu0 %v7205_v13  ;;  %1566 = vmatmul.mubr.f32.gmra.mrb[14].mxu1 %v7205_v13 }
  0xad   :  { %830 = vmatprep.mubr.f32.mxu0 %v8994_v5  ;;  %1638 = vmatprep.mubr.f32.mxu1 %v8994_v5 }
  0xb0   :  { %832 = vmatmul.mubr.f32.vlgmr.msra.gmra.mrb[0].mxu0 %v7078_v21  ;;  %1640 = vmatmul.mubr.f32.vlgmr.msra.gmra.mrb[0].mxu1 %v7078_v21 }
  0xb1   :  { %837 = vmatprep.mubr.f32.mxu0 %v8994_v5  ;;  %1645 = vmatprep.mubr.f32.mxu1 %v8994_v5 }
  0xb2   :  { %1698 = vmatpush1.msra.mxu0 %v7428_v49  ;;  %2506 = vmatpush1.msra.mxu1 %v7430_v50 }
  0xb3   :  { %1855 = vmatprep.subr.mxu0 %v1854_v51  ;;  %2663 = vmatprep.subr.mxu1 %v2662_v52 }
  0xb4   :  { %839 = vmatmul.mubr.f32.gmra.mrb[2].mxu0 %v7080_v22  ;;  %1647 = vmatmul.mubr.f32.gmra.mrb[2].mxu1 %v7080_v22 }
  0xb5   :  { %844 = vmatprep.mubr.f32.mxu0 %v8994_v5  ;;  %1652 = vmatprep.mubr.f32.mxu1 %v8994_v5 }
  0xb8   :  { %846 = vmatmul.mubr.f32.gmra.mrb[4].mxu0 %v7102_v31  ;;  %1654 = vmatmul.mubr.f32.gmra.mrb[4].mxu1 %v7102_v31 }
  0xb9   :  { %851 = vmatprep.mubr.f32.mxu0 %v8994_v5  ;;  %1659 = vmatprep.mubr.f32.mxu1 %v8994_v5 }
  0xbc   :  { %853 = vmatmul.mubr.f32.gmra.mrb[6].mxu0 %v7104_v32  ;;  %1661 = vmatmul.mubr.f32.gmra.mrb[6].mxu1 %v7104_v32 }
  0xbd   :  { %858 = vmatprep.mubr.f32.mxu0 %v8994_v5  ;;  %1666 = vmatprep.mubr.f32.mxu1 %v8994_v5 }
  0xc0   :  { %860 = vmatmul.mubr.f32.gmra.mrb[8].mxu0 %v7155_v57  ;;  %1668 = vmatmul.mubr.f32.gmra.mrb[8].mxu1 %v7155_v57 }
  0xc1   :  { %865 = vmatprep.mubr.f32.mxu0 %v8994_v5  ;;  %1673 = vmatprep.mubr.f32.mxu1 %v8994_v5 }
  0xc4   :  { %867 = vmatmul.mubr.f32.gmra.mrb[10].mxu0 %v7163_v60  ;;  %1675 = vmatmul.mubr.f32.gmra.mrb[10].mxu1 %v7163_v60 }
  0xc5   :  { %872 = vmatprep.mubr.f32.mxu0 %v8994_v5  ;;  %1680 = vmatprep.mubr.f32.mxu1 %v8994_v5 }
  0xc8   :  { %874 = vmatmul.mubr.f32.gmra.mrb[12].mxu0 %v7188_v4  ;;  %1682 = vmatmul.mubr.f32.gmra.mrb[12].mxu1 %v7188_v4 }
  0xc9   :  { %879 = vmatprep.mubr.f32.mxu0 %v8994_v5  ;;  %1687 = vmatprep.mubr.f32.mxu1 %v8994_v5 }
  0xcc   :  { %881 = vmatmul.mubr.f32.gmra.mrb[14].mxu0 %v7205_v13  ;;  %1689 = vmatmul.mubr.f32.gmra.mrb[14].mxu1 %v7205_v13 }
  0xcd   :  { %1761 = vmatprep.mubr.f32.mxu0 %v8994_v5  ;;  %2569 = vmatprep.mubr.f32.mxu1 %v8994_v5 }
  0xd0   :  { %1767 = vmatmul.mubr.f32.vlgmr.msra.gmra.mrb[16].mxu0 %v7147_v53  ;;  %2575 = vmatmul.mubr.f32.vlgmr.msra.gmra.mrb[16].mxu1 %v7147_v53 }
  0xd1   :  { %1772 = vmatprep.mubr.f32.mxu0 %v8994_v5  ;;  %1861 = vmatpush1.msra.mxu0 %v1860_v6 }
  0xd2   :  { %2580 = vmatprep.mubr.f32.mxu1 %v8994_v5  ;;  %2669 = vmatpush1.msra.mxu1 %v2668_v8 }
  0xd3   :  { %1983 = vmatprep.subr.mxu0 %v7401_v9  ;;  %2791 = vmatprep.subr.mxu1 %v7404_v10 }
  0xd4   :  { %1778 = vmatmul.mubr.f32.gmra.mrb[18].mxu0 %v7159_v58  ;;  %2586 = vmatmul.mubr.f32.gmra.mrb[18].mxu1 %v7159_v58 }
  0xd5   :  { %1783 = vmatprep.mubr.f32.mxu0 %v8994_v5  ;;  %2591 = vmatprep.mubr.f32.mxu1 %v8994_v5 }
  0xd8   :  { %1789 = vmatmul.mubr.f32.gmra.mrb[20].mxu0 %v7180_v1  ;;  %2597 = vmatmul.mubr.f32.gmra.mrb[20].mxu1 %v7180_v1 }
  0xd9   :  { %1794 = vmatprep.mubr.f32.mxu0 %v8994_v5  ;;  %2602 = vmatprep.mubr.f32.mxu1 %v8994_v5 }
  0xdc   :  { %1800 = vmatmul.mubr.f32.gmra.mrb[22].mxu0 %v7193_v7  ;;  %2608 = vmatmul.mubr.f32.gmra.mrb[22].mxu1 %v7193_v7 }
  0xdd   :  { %1805 = vmatprep.mubr.f32.mxu0 %v8994_v5  ;;  %2613 = vmatprep.mubr.f32.mxu1 %v8994_v5 }
  0xe0   :  { %1811 = vmatmul.mubr.f32.gmra.mrb[24].mxu0 %v7211_v14  ;;  %2619 = vmatmul.mubr.f32.gmra.mrb[24].mxu1 %v7211_v14 }
  0xe1   :  { %1816 = vmatprep.mubr.f32.mxu0 %v8994_v5  ;;  %2624 = vmatprep.mubr.f32.mxu1 %v8994_v5 }
  0xe4   :  { %1822 = vmatmul.mubr.f32.gmra.mrb[26].mxu0 %v7225_v24  ;;  %2630 = vmatmul.mubr.f32.gmra.mrb[26].mxu1 %v7225_v24 }
  0xe5   :  { %1827 = vmatprep.mubr.f32.mxu0 %v8994_v5  ;;  %2635 = vmatprep.mubr.f32.mxu1 %v8994_v5 }
  0xe8   :  { %1833 = vmatmul.mubr.f32.gmra.mrb[28].mxu0 %v7236_v40  ;;  %2641 = vmatmul.mubr.f32.gmra.mrb[28].mxu1 %v7236_v40 }
  0xe9   :  { %1838 = vmatprep.mubr.f32.mxu0 %v8994_v5  ;;  %2646 = vmatprep.mubr.f32.mxu1 %v8994_v5 }
  0xec   :  { %1844 = vmatmul.mubr.f32.gmra.mrb[30].mxu0 %v7244_v42  ;;  %2652 = vmatmul.mubr.f32.gmra.mrb[30].mxu1 %v7244_v42 }
  0xed   :  { %1924 = vmatprep.mubr.f32.mxu0 %v8994_v5  ;;  %2732 = vmatprep.mubr.f32.mxu1 %v8994_v5 }
  0xf0   :  { %1926 = vmatmul.mubr.f32.vlgmr.msra.gmra.mrb[16].mxu0 %v7078_v21  ;;  %2734 = vmatmul.mubr.f32.vlgmr.msra.gmra.mrb[16].mxu1 %v7078_v21 }
  0xf1   :  { %1931 = vmatprep.mubr.f32.mxu0 %v8994_v5  ;;  %1986 = vmatpush1.msra.mxu0 %v7453_v54 }
  0xf2   :  { %2739 = vmatprep.mubr.f32.mxu1 %v8994_v5  ;;  %2794 = vmatpush1.msra.mxu1 %v7458_v55 }
  0xf3   :  { %2115 = vmatprep.subr.mxu0 %v7372_v27  ;;  %2923 = vmatprep.subr.mxu1 %v7374_v28 }
  0xf4   :  { %1933 = vmatmul.mubr.f32.gmra.mrb[18].mxu0 %v7080_v22  ;;  %2741 = vmatmul.mubr.f32.gmra.mrb[18].mxu1 %v7080_v22 }
  0xf5   :  { %1938 = vmatprep.mubr.f32.mxu0 %v8994_v5  ;;  %2746 = vmatprep.mubr.f32.mxu1 %v8994_v5 }
  0xf8   :  { %1940 = vmatmul.mubr.f32.gmra.mrb[20].mxu0 %v7102_v31  ;;  %2748 = vmatmul.mubr.f32.gmra.mrb[20].mxu1 %v7102_v31 }
  0xf9   :  { %1945 = vmatprep.mubr.f32.mxu0 %v8994_v5  ;;  %2753 = vmatprep.mubr.f32.mxu1 %v8994_v5 }
  0xfc   :  { %1947 = vmatmul.mubr.f32.gmra.mrb[22].mxu0 %v7104_v32  ;;  %2755 = vmatmul.mubr.f32.gmra.mrb[22].mxu1 %v7104_v32 }
  0xfd   :  { %1952 = vmatprep.mubr.f32.mxu0 %v8994_v5  ;;  %2760 = vmatprep.mubr.f32.mxu1 %v8994_v5 }
 0x100   :  { %1954 = vmatmul.mubr.f32.gmra.mrb[24].mxu0 %v7155_v57  ;;  %2762 = vmatmul.mubr.f32.gmra.mrb[24].mxu1 %v7155_v57 }
 0x101   :  { %1959 = vmatprep.mubr.f32.mxu0 %v8994_v5  ;;  %2767 = vmatprep.mubr.f32.mxu1 %v8994_v5 }
 0x104   :  { %1961 = vmatmul.mubr.f32.gmra.mrb[26].mxu0 %v7163_v60  ;;  %2769 = vmatmul.mubr.f32.gmra.mrb[26].mxu1 %v7163_v60 }
 0x105   :  { %1966 = vmatprep.mubr.f32.mxu0 %v8994_v5  ;;  %2774 = vmatprep.mubr.f32.mxu1 %v8994_v5 }
 0x108   :  { %1968 = vmatmul.mubr.f32.gmra.mrb[28].mxu0 %v7188_v4  ;;  %2776 = vmatmul.mubr.f32.gmra.mrb[28].mxu1 %v7188_v4 }
 0x109   :  { %1973 = vmatprep.mubr.f32.mxu0 %v8994_v5  ;;  %2781 = vmatprep.mubr.f32.mxu1 %v8994_v5 }
 0x10c   :  { %1975 = vmatmul.mubr.f32.gmra.mrb[30].mxu0 %v7205_v13  ;;  %2783 = vmatmul.mubr.f32.gmra.mrb[30].mxu1 %v7205_v13 }
 0x10d   :  { %2049 = vmatprep.mubr.f32.mxu0 %v8994_v5  ;;  %2857 = vmatprep.mubr.f32.mxu1 %v8994_v5 }
 0x110   :  { %2052 = vmatmul.mubr.f32.vlgmr.msra.gmra.mrb[16].mxu0 %v7097_v29  ;;  %2860 = vmatmul.mubr.f32.vlgmr.msra.gmra.mrb[16].mxu1 %v7097_v29  ;;  %v27_v29 = vld [vmem:[%s8986_s2] sm:$0xff] }
 0x111   :  { %2057 = vmatprep.mubr.f32.mxu0 %v8994_v5  ;;  %2117 = vmatpush1.msra.mxu0 %v7428_v49 }
 0x112   :  { %2865 = vmatprep.mubr.f32.mxu1 %v8994_v5  ;;  %2925 = vmatpush1.msra.mxu1 %v7430_v50 }
 0x113   :  { %2256 = vmatprep.subr.mxu0 %v1852_v33  ;;  %3064 = vmatprep.subr.mxu1 %v2660_v34 }
 0x114   :  { %2060 = vmatmul.mubr.f32.gmra.mrb[18].mxu0 %v7100_v30  ;;  %2868 = vmatmul.mubr.f32.gmra.mrb[18].mxu1 %v7100_v30  ;;  %v3377_v30 = vsel %vm3375_vm2, %v27_v29, 0 }
 0x115   :  { %2065 = vmatprep.mubr.f32.mxu0 %v8994_v5  ;;  %2873 = vmatprep.mubr.f32.mxu1 %v8994_v5 }
 0x118   :  { %2068 = vmatmul.mubr.f32.gmra.mrb[20].mxu0 %v7121_v39  ;;  %2876 = vmatmul.mubr.f32.gmra.mrb[20].mxu1 %v7121_v39 }
 0x119   :  { %2073 = vmatprep.mubr.f32.mxu0 %v8994_v5  ;;  %2881 = vmatprep.mubr.f32.mxu1 %v8994_v5 }
 0x11c   :  { %2076 = vmatmul.mubr.f32.gmra.mrb[22].mxu0 %v7136_v44  ;;  %2884 = vmatmul.mubr.f32.gmra.mrb[22].mxu1 %v7136_v44 }
 0x11d   :  { %2081 = vmatprep.mubr.f32.mxu0 %v8994_v5  ;;  %2889 = vmatprep.mubr.f32.mxu1 %v8994_v5 }
 0x120   :  { %2084 = vmatmul.mubr.f32.gmra.mrb[24].mxu0 %v7167_v61  ;;  %2892 = vmatmul.mubr.f32.gmra.mrb[24].mxu1 %v7167_v61 }
 0x121   :  { %2089 = vmatprep.mubr.f32.mxu0 %v8994_v5  ;;  %2897 = vmatprep.mubr.f32.mxu1 %v8994_v5 }
 0x124   :  { %2092 = vmatmul.mubr.f32.gmra.mrb[26].mxu0 %v7186_v3  ;;  %2900 = vmatmul.mubr.f32.gmra.mrb[26].mxu1 %v7186_v3 }
 0x125   :  { %2097 = vmatprep.mubr.f32.mxu0 %v8994_v5  ;;  %2905 = vmatprep.mubr.f32.mxu1 %v8994_v5 }
 0x128   :  { %2100 = vmatmul.mubr.f32.gmra.mrb[28].mxu0 %v7203_v12  ;;  %2908 = vmatmul.mubr.f32.gmra.mrb[28].mxu1 %v7203_v12 }
 0x129   :  { %2105 = vmatprep.mubr.f32.mxu0 %v8994_v5  ;;  %2913 = vmatprep.mubr.f32.mxu1 %v8994_v5 }
 0x12c   :  { %2108 = vmatmul.mubr.f32.gmra.mrb[30].mxu0 %v7219_v23  ;;  %2916 = vmatmul.mubr.f32.gmra.mrb[30].mxu1 %v7219_v23 }
 0x12d   :  { %2180 = vmatprep.mubr.f32.mxu0 %v8994_v5  ;;  %2988 = vmatprep.mubr.f32.mxu1 %v8994_v5 }
 0x130   :  { %2184 = vmatmul.mubr.f32.vlgmr.msra.gmra.mrb[16].mxu0 %v7112_v36  ;;  %2992 = vmatmul.mubr.f32.vlgmr.msra.gmra.mrb[16].mxu1 %v7112_v36  ;;  %v7674_v36 = vand.u32 4294901760, %v3377_v30 }
 0x131   :  { %2189 = vmatprep.mubr.f32.mxu0 %v8994_v5  ;;  %2260 = vmatpush1.msra.mxu0 %v1858_v59 }
 0x132   :  { %2997 = vmatprep.mubr.f32.mxu1 %v8994_v5  ;;  %3068 = vmatpush1.msra.mxu1 %v2666_v62  ;;  %9109 = vst [vmem:[#allocation5_spill] sm:$0xff] %v7674_v36 }
 0x133   :  { %2381 = vmatprep.subr.mxu0 %v7372_v27  ;;  %3189 = vmatprep.subr.mxu1 %v7374_v28 }
 0x134   :  { %2193 = vmatmul.mubr.f32.gmra.mrb[18].mxu0 %v7118_v38  ;;  %3001 = vmatmul.mubr.f32.gmra.mrb[18].mxu1 %v7118_v38 }
 0x135   :  { %2198 = vmatprep.mubr.f32.mxu0 %v8994_v5  ;;  %3006 = vmatprep.mubr.f32.mxu1 %v8994_v5 }
 0x138   :  { %2202 = vmatmul.mubr.f32.gmra.mrb[20].mxu0 %v7143_v48  ;;  %3010 = vmatmul.mubr.f32.gmra.mrb[20].mxu1 %v7143_v48 }
 0x139   :  { %2207 = vmatprep.mubr.f32.mxu0 %v8994_v5  ;;  %3015 = vmatprep.mubr.f32.mxu1 %v8994_v5 }
 0x13c   :  { %2211 = vmatmul.mubr.f32.gmra.mrb[22].mxu0 %v7153_v56  ;;  %3019 = vmatmul.mubr.f32.gmra.mrb[22].mxu1 %v7153_v56 }
 0x13d   :  { %2216 = vmatprep.mubr.f32.mxu0 %v8994_v5  ;;  %3024 = vmatprep.mubr.f32.mxu1 %v8994_v5 }
 0x140   :  { %2220 = vmatmul.mubr.f32.gmra.mrb[24].mxu0 %v7183_v2  ;;  %3028 = vmatmul.mubr.f32.gmra.mrb[24].mxu1 %v7183_v2 }
 0x141   :  { %2225 = vmatprep.mubr.f32.mxu0 %v8994_v5  ;;  %3033 = vmatprep.mubr.f32.mxu1 %v8994_v5 }
 0x144   :  { %2229 = vmatmul.mubr.f32.gmra.mrb[26].mxu0 %v7200_v11  ;;  %3037 = vmatmul.mubr.f32.gmra.mrb[26].mxu1 %v7200_v11 }
 0x145   :  { %2234 = vmatprep.mubr.f32.mxu0 %v8994_v5  ;;  %3042 = vmatprep.mubr.f32.mxu1 %v8994_v5 }
 0x148   :  { %2238 = vmatmul.mubr.f32.gmra.mrb[28].mxu0 %v7216_v16  ;;  %3046 = vmatmul.mubr.f32.gmra.mrb[28].mxu1 %v7216_v16 }
 0x149   :  { %2243 = vmatprep.mubr.f32.mxu0 %v8994_v5  ;;  %3051 = vmatprep.mubr.f32.mxu1 %v8994_v5 }
 0x14c   :  { %2247 = vmatmul.mubr.f32.gmra.mrb[30].mxu0 %v7230_v37  ;;  %3055 = vmatmul.mubr.f32.gmra.mrb[30].mxu1 %v7230_v37 }
 0x14d   :  { %2323 = vmatprep.mubr.f32.mxu0 %v8994_v5  ;;  %3131 = vmatprep.mubr.f32.mxu1 %v8994_v5 }
 0x150   :  { %2325 = vmatmul.mubr.f32.vlgmr.msra.gmra.mrb[16].mxu0 %v7078_v21  ;;  %3133 = vmatmul.mubr.f32.vlgmr.msra.gmra.mrb[16].mxu1 %v7078_v21 }
 0x151   :  { %2330 = vmatprep.mubr.f32.mxu0 %v8994_v5  ;;  %2383 = vmatpush1.msra.mxu0 %v7428_v49 }
 0x152   :  { %3138 = vmatprep.mubr.f32.mxu1 %v8994_v5  ;;  %3191 = vmatpush1.msra.mxu1 %v7430_v50 }
 0x154   :  { %2332 = vmatmul.mubr.f32.gmra.mrb[18].mxu0 %v7080_v22  ;;  %3140 = vmatmul.mubr.f32.gmra.mrb[18].mxu1 %v7080_v22 }
 0x155   :  { %2337 = vmatprep.mubr.f32.mxu0 %v8994_v5  ;;  %3145 = vmatprep.mubr.f32.mxu1 %v8994_v5 }
 0x158   :  { %2339 = vmatmul.mubr.f32.gmra.mrb[20].mxu0 %v7102_v31  ;;  %3147 = vmatmul.mubr.f32.gmra.mrb[20].mxu1 %v7102_v31 }
 0x159   :  { %2344 = vmatprep.mubr.f32.mxu0 %v8994_v5  ;;  %3152 = vmatprep.mubr.f32.mxu1 %v8994_v5 }
 0x15c   :  { %2346 = vmatmul.mubr.f32.gmra.mrb[22].mxu0 %v7104_v32  ;;  %3154 = vmatmul.mubr.f32.gmra.mrb[22].mxu1 %v7104_v32 }
 0x15d   :  { %2351 = vmatprep.mubr.f32.mxu0 %v8994_v5  ;;  %3159 = vmatprep.mubr.f32.mxu1 %v8994_v5 }
 0x160   :  { %2353 = vmatmul.mubr.f32.gmra.mrb[24].mxu0 %v7155_v57  ;;  %3161 = vmatmul.mubr.f32.gmra.mrb[24].mxu1 %v7155_v57 }
 0x161   :  { %2358 = vmatprep.mubr.f32.mxu0 %v8994_v5  ;;  %3166 = vmatprep.mubr.f32.mxu1 %v8994_v5 }
 0x164   :  { %2360 = vmatmul.mubr.f32.gmra.mrb[26].mxu0 %v7163_v60  ;;  %3168 = vmatmul.mubr.f32.gmra.mrb[26].mxu1 %v7163_v60 }
 0x165   :  { %2365 = vmatprep.mubr.f32.mxu0 %v8994_v5  ;;  %3173 = vmatprep.mubr.f32.mxu1 %v8994_v5 }
 0x168   :  { %2367 = vmatmul.mubr.f32.gmra.mrb[28].mxu0 %v7188_v4  ;;  %3175 = vmatmul.mubr.f32.gmra.mrb[28].mxu1 %v7188_v4 }
 0x169   :  { %2372 = vmatprep.mubr.f32.mxu0 %v8994_v5  ;;  %3180 = vmatprep.mubr.f32.mxu1 %v8994_v5 }
 0x16c   :  { %2374 = vmatmul.mubr.f32.gmra.mrb[30].mxu0 %v7205_v13  ;;  %3182 = vmatmul.mubr.f32.gmra.mrb[30].mxu1 %v7205_v13 }
 0x16d   :  { %2446 = vmatprep.mubr.f32.mxu0 %v8994_v5  ;;  %3254 = vmatprep.mubr.f32.mxu1 %v8994_v5 }
 0x170   :  { %2448 = vmatmul.mubr.f32.vlgmr.msra.gmra.mrb[16].mxu0 %v7078_v21  ;;  %3256 = vmatmul.mubr.f32.vlgmr.msra.gmra.mrb[16].mxu1 %v7078_v21  ;;  %v28_v21 = vld [vmem:[%s8986_s2 + $0x8] sm:$0xff]  ;;  %s7015_s2 = smov [#allocation2]  }
 0x171   :  { %2453 = vmatprep.mubr.f32.mxu0 %v8994_v5  ;;  %3261 = vmatprep.mubr.f32.mxu1 %v8994_v5  ;;  %v3380_v38 = vsel %vm3375_vm2, %v28_v21, 0  ;;  %s6187_s11 = sshll.u32 %s7015_s2, 4  ;;  %s6188_s11 = int_to_ptr.vmem [resolvable:$true] %s6187_s11 }
 0x172   :  { %v7683_v39 = vand.u32 4294901760, %v3380_v38  ;;  %s6990_s12 = scalar_lea.vmem %s6188_s11, 2048  ;;  %p6995_p1 = scmp.lt.s32.totalorder %s6188_s11, %s6188_s11 }
 0x173   :  { %p6991_p0 = scmp.ne.s32.totalorder %s6188_s11, %s6990_s12  ;;  %p6996_p2 = scmp.lt.s32.totalorder %s6990_s12, %s6990_s12 }
 0x174   :  { %2455 = vmatmul.mubr.f32.gmra.mrb[18].mxu0 %v7080_v22  ;;  %3263 = vmatmul.mubr.f32.gmra.mrb[18].mxu1 %v7080_v22  ;;  %v7681_v22 = vsub.f32 %v3377_v30, %v7674_v36  ;;  %9111 = vst [vmem:[#allocation7_spill] sm:$0xff] %v7683_v39  ;;  %v7693_v44 = vsub.f32 %v3380_v38, %v7683_v39 }
 0x175   :  { %2460 = vmatprep.mubr.f32.mxu0 %v8994_v5  ;;  %3268 = vmatprep.mubr.f32.mxu1 %v8994_v5  ;;  %p6997_p3 = por %p6996_p2, %p6995_p1 }
 0x176   :  { %9110 = vst [vmem:[#allocation6_spill] sm:$0xff] %v7681_v22  ;;  %9113 = vst [vmem:[#allocation9_spill] sm:$0xff] %v7693_v44  ;;  %v7702_v56 = vand.u32 4294901760, %v7693_v44 }
 0x177   :  { %p6998_p4 = pnand %p6997_p3, %p6991_p0 }
 0x178   :  { %2462 = vmatmul.mubr.f32.gmra.mrb[20].mxu0 %v7102_v31  ;;  %3270 = vmatmul.mubr.f32.gmra.mrb[20].mxu1 %v7102_v31  ;;  %v7690_v31 = vand.u32 4294901760, %v7681_v22  ;;  %9114 = vst [vmem:[#allocation10_spill] sm:$0xff] %v7702_v56  ;;  %v3477_v24 = vsub.f32 %v7693_v44, %v7702_v56 }
 0x179   :  { %2467 = vmatprep.mubr.f32.mxu0 %v8994_v5  ;;  %3275 = vmatprep.mubr.f32.mxu1 %v8994_v5 }
 0x17a   :  { %9112 = vst [vmem:[#allocation8_spill] sm:$0xff] %v7690_v31  ;;  %v3466_v53 = vsub.f32 %v7681_v22, %v7690_v31  ;;  %v7735_v43 = vand.u32 4294901760, %v3477_v24 }
 0x17c   :  { %2469 = vmatmul.mubr.f32.gmra.mrb[22].mxu0 %v7104_v32  ;;  %3277 = vmatmul.mubr.f32.gmra.mrb[22].mxu1 %v7104_v32  ;;  %v7712_v23 = vand.u32 4294901760, %v3466_v53 }
 0x17d   :  { %2474 = vmatprep.mubr.f32.mxu0 %v8994_v5  ;;  %3282 = vmatprep.mubr.f32.mxu1 %v8994_v5 }
 0x180   :  { %2476 = vmatmul.mubr.f32.gmra.mrb[24].mxu0 %v7155_v57  ;;  %3284 = vmatmul.mubr.f32.gmra.mrb[24].mxu1 %v7155_v57 }
 0x181   :  { %2481 = vmatprep.mubr.f32.mxu0 %v8994_v5  ;;  %3289 = vmatprep.mubr.f32.mxu1 %v8994_v5 }
 0x183   :  { %v833_v48 = vpop.f32.mrb[0].mxu0  ;;  %v1641_v32 = vpop.f32.mrb[0].mxu1 }
 0x184   :  { %v3311_v58 = vmax.f32 %v833_v48, 0.0  ;;  %v3313_v61 = vmax.f32 %v1641_v32, 0.0  ;;  %v835_v1 = vpop.f32.mrb[1].mxu0  ;;  %v1643_v2 = vpop.f32.mrb[1].mxu1  ;;  %2483 = vmatmul.mubr.f32.gmra.mrb[26].mxu0 %v7163_v60  ;;  %3291 = vmatmul.mubr.f32.gmra.mrb[26].mxu1 %v7163_v60 }
 0x185   :  { %v3312_v57 = vmax.f32 %v835_v1, 0.0  ;;  %v3314_v3 = vmax.f32 %v1643_v2, 0.0  ;;  %2488 = vmatprep.mubr.f32.mxu0 %v8994_v5  ;;  %3296 = vmatprep.mubr.f32.mxu1 %v8994_v5 }
 0x186   :  { %v3384_v7 = vand.u32 4294901760, %v3311_v58  ;;  %v4080_v11 = vand.u32 4294901760, %v3313_v61 }
 0x187   :  { %v7708_v12 = vand.u32 4294901760, %v3312_v57  ;;  %v7710_v14 = vand.u32 4294901760, %v3314_v3  ;;  %v840_v15 = vpop.f32.mrb[2].mxu0  ;;  %v1648_v16 = vpop.f32.mrb[2].mxu1 }
 0x188   :  { %v7716_v60 = vsub.f32 %v3311_v58, %v3384_v7  ;;  %v7718_v35 = vsub.f32 %v3313_v61, %v4080_v11  ;;  %v3319_v37 = vmax.f32 %v840_v15, 0.0  ;;  %v3321_v40 = vmax.f32 %v1648_v16, 0.0  ;;  %v842_v41 = vpop.f32.mrb[3].mxu0  ;;  %v1650_v42 = vpop.f32.mrb[3].mxu1  ;;  %2490 = vmatmul.mubr.f32.gmra.mrb[28].mxu0 %v7188_v4  ;;  %3298 = vmatmul.mubr.f32.gmra.mrb[28].mxu1 %v7188_v4 }
 0x189   :  { %v7723_v17 = vsub.f32 %v3312_v57, %v7708_v12  ;;  %v7726_v18 = vsub.f32 %v3314_v3, %v7710_v14  ;;  %v3320_v19 = vmax.f32 %v842_v41, 0.0  ;;  %v3322_v20 = vmax.f32 %v1650_v42, 0.0  ;;  %2495 = vmatprep.mubr.f32.mxu0 %v8994_v5  ;;  %3303 = vmatprep.mubr.f32.mxu1 %v8994_v5 }
 0x18a   :  { %v8993_v25 = vand.u32 4294901760, %v7716_v60  ;;  %v8989_v26 = vand.u32 4294901760, %v7718_v35  ;;  %v3388_v27 = vand.u32 4294901760, %v3319_v37  ;;  %v4084_v28 = vand.u32 4294901760, %v3321_v40 }
 0x18b   :  { %v3386_v9 = vand.u32 4294901760, %v3320_v19  ;;  %v7733_v10 = vand.u32 4294901760, %v3322_v20  ;;  %v847_v33 = vpop.f32.mrb[4].mxu0  ;;  %v1655_v34 = vpop.f32.mrb[4].mxu1 }
 0x18c   :  { %v7740_v45 = vsub.f32 %v7716_v60, %v8993_v25  ;;  %v7745_v46 = vsub.f32 %v7718_v35, %v8989_v26  ;;  %v7747_v47 = vpack.c.bf16 %v3388_v27, %v3384_v7  ;;  %v7749_v49 = vsub.f32 %v3319_v37, %v3388_v27  ;;  %v849_v50 = vpop.f32.mrb[5].mxu0  ;;  %v1657_v51 = vpop.f32.mrb[5].mxu1  ;;  %2497 = vmatmul.mubr.f32.gmra.mrb[30].mxu0 %v7205_v13 }
 0x18d   :  { %v7753_v54 = vpack.c.bf16 %v4084_v28, %v4080_v11  ;;  %v7755_v55 = vsub.f32 %v3321_v40, %v4084_v28  ;;  %v7757_v59 = vsub.f32 %v3320_v19, %v3386_v9  ;;  %3305 = vmatmul.mubr.f32.gmra.mrb[30].mxu1 %v7205_v13  ;;  %v7765_v6 = vsub.f32 %v3322_v20, %v7733_v10 }
 0x18e   :  { %9115 = vst [vmem:[#allocation11_spill] sm:$0xff] %v7747_v47  ;;  %v8992_v63 = vand.u32 4294901760, %v7749_v49  ;;  %3462 = vmatprep.mubr.f32.mxu0 %v8994_v5  ;;  %4158 = vmatprep.mubr.f32.mxu1 %v8994_v5  ;;  %v3327_v32 = vmax.f32 %v847_v33, 0.0  ;;  %v3329_v53 = vmax.f32 %v1655_v34, 0.0  ;;  %v3328_v58 = vmax.f32 %v849_v50, 0.0 }
 0x18f   :  { %9116 = vst [vmem:[#allocation12_spill] sm:$0xff] %v7753_v54  ;;  %v8988_v29 = vand.u32 4294901760, %v7755_v55  ;;  %v854_v21 = vpop.f32.mrb[6].mxu0  ;;  %v1662_v38 = vpop.f32.mrb[6].mxu1  ;;  %v3330_v57 = vmax.f32 %v1657_v51, 0.0  ;;  %v7802_v34 = vpack.c.bf16 %v3386_v9, %v7708_v12 }
 0x190   :  { %v7777_v48 = vsub.f32 %v7749_v49, %v8992_v63  ;;  %v7779_v61 = vpop.f32.mrb[7].mxu0  ;;  %v7781_v1 = vpop.f32.mrb[7].mxu1  ;;  %v3335_v3 = vmax.f32 %v854_v21, 0.0  ;;  %v3337_v7 = vmax.f32 %v1662_v38, 0.0  ;;  %v3392_v15 = vand.u32 4294901760, %v3327_v32 }
 0x191   :  { %v7786_v2 = vsub.f32 %v7755_v55, %v8988_v29  ;;  %v4088_v16 = vand.u32 4294901760, %v3329_v53  ;;  %v7789_v24 = vand.u32 4294901760, %v3328_v58  ;;  %v7792_v40 = vand.u32 4294901760, %v3330_v57  ;;  %9117 = vst [vmem:[#allocation13_spill] sm:$0xff] %v7802_v34  ;;  %6199 = vmatprep.subr.bf16.mxu0 %v7802_v34 }
 0x192   :  { %v3396_v41 = vand.u32 4294901760, %v3335_v3  ;;  %v4092_v42 = vand.u32 4294901760, %v3337_v7  ;;  %v7794_v27 = vsub.f32 %v3327_v32, %v3392_v15  ;;  %6201 = vmatpush1.bf16.msra.mxu0 %v7747_v47 }
 0x193   :  { %v861_v19 = vpop.f32.mrb[8].mxu0  ;;  %v1669_v20 = vpop.f32.mrb[8].mxu1  ;;  %v7796_v28 = vsub.f32 %v3329_v53, %v4088_v16  ;;  %v7799_v33 = vsub.f32 %v3328_v58, %v7789_v24  ;;  %v7814_v58 = vsub.f32 %v3330_v57, %v7792_v40 }
 0x194   :  { %v863_v50 = vpop.f32.mrb[9].mxu0  ;;  %v1671_v51 = vpop.f32.mrb[9].mxu1  ;;  %v7805_v38 = vpack.c.bf16 %v3396_v41, %v3392_v15  ;;  %v7807_v13 = vsub.f32 %v3335_v3, %v3396_v41  ;;  %v7809_v0 = vpack.c.bf16 %v4092_v42, %v4088_v16  ;;  %v8990_v32 = vand.u32 4294901760, %v7794_v27 }
 0x195   :  { %v8991_v53 = vand.u32 4294901760, %v7796_v28  ;;  %v7816_v29 = vsub.f32 %v3337_v7, %v4092_v42  ;;  %v7825_v15 = vpack.c.bf16 %v7733_v10, %v7710_v14  ;;  %v3343_v63 = vmax.f32 %v861_v19, 0.0 }
 0x196   :  { %9118 = vst [vmem:[#allocation14_spill] sm:$0xff] %v7805_v38  ;;  %9119 = vst [vmem:[#allocation15_spill] sm:$0xff] %v7809_v0  ;;  %v8996_v9 = vand.u32 4294901760, %v7807_v13  ;;  %v7831_v7 = vsub.f32 %v7794_v27, %v8990_v32  ;;  %v3336_v32 = vmax.f32 %v7779_v61, 0.0  ;;  %v3345_v12 = vmax.f32 %v1669_v20, 0.0 }
 0x197   :  { %9120 = vst [vmem:[#allocation16_spill] sm:$0xff] %v7825_v15  ;;  %v868_v16 = vpop.f32.mrb[10].mxu0  ;;  %v1676_v57 = vpop.f32.mrb[10].mxu1  ;;  %v7836_v41 = vsub.f32 %v7796_v28, %v8991_v53  ;;  %v8997_v42 = vand.u32 4294901760, %v7816_v29  ;;  %6295 = vmatprep.subr.bf16.mxu1 %v7825_v15  ;;  %v3338_v53 = vmax.f32 %v7781_v1, 0.0  ;;  %v3400_v61 = vand.u32 4294901760, %v3343_v63 }
 0x198   :  { %v7841_v10 = vpop.f32.mrb[11].mxu0  ;;  %v7843_v3 = vpop.f32.mrb[11].mxu1  ;;  %v7848_v26 = vsub.f32 %v7807_v13, %v8996_v9  ;;  %6297 = vmatpush1.bf16.msra.mxu1 %v7753_v54  ;;  %v3394_v21 = vand.u32 4294901760, %v3336_v32  ;;  %v4096_v14 = vand.u32 4294901760, %v3345_v12  ;;  %v3344_v25 = vmax.f32 %v863_v50, 0.0 }
 0x199   :  { %v7860_v9 = vsub.f32 %v7816_v29, %v8997_v42  ;;  %v4090_v8 = vand.u32 4294901760, %v3338_v53  ;;  %v3346_v5 = vmax.f32 %v1671_v51, 0.0  ;;  %v7875_v52 = vsub.f32 %v3343_v63, %v3400_v61 }
 0x19a   :  { %v7871_v11 = vsub.f32 %v3336_v32, %v3394_v21  ;;  %v3351_v30 = vmax.f32 %v868_v16, 0.0  ;;  %v7877_v4 = vsub.f32 %v3345_v12, %v4096_v14  ;;  %v7879_v56 = vand.u32 4294901760, %v3344_v25 }
 0x19b   :  { %v7862_v37 = vpop.f32.mrb[12].mxu0  ;;  %v7864_v1 = vpop.f32.mrb[12].mxu1  ;;  %v7873_v42 = vsub.f32 %v3338_v53, %v4090_v8  ;;  %v7881_v31 = vand.u32 4294901760, %v3346_v5  ;;  %v3353_v19 = vmax.f32 %v1676_v57, 0.0  ;;  %v9018_v44 = vand.u32 4294901760, %v7875_v52 }
 0x19c   :  { %v7867_v62 = vpop.f32.mrb[13].mxu0  ;;  %v7869_v20 = vpop.f32.mrb[13].mxu1  ;;  %9121 = vst [vmem:[#allocation17_spill] sm:$0xff] %v7877_v4  ;;  %v3404_v32 = vand.u32 4294901760, %v3351_v30  ;;  %v9019_v63 = vand.u32 4294901760, %v7877_v4  ;;  %v7892_v12 = vsub.f32 %v3344_v25, %v7879_v56  ;;  %v7911_v25 = vpack.c.bf16 %v3394_v21, %v7789_v24 }
 0x19d   :  { %v7895_v16 = vsub.f32 %v3346_v5, %v7881_v31  ;;  %v4100_v57 = vand.u32 4294901760, %v3353_v19  ;;  %v7904_v51 = vsub.f32 %v7875_v52, %v9018_v44 }
 0x19e   :  { %v7906_v22 = vpack.c.bf16 %v3404_v32, %v3400_v61  ;;  %v7908_v15 = vsub.f32 %v3351_v30, %v3404_v32  ;;  %9124 = vst [vmem:[#allocation20_spill] sm:$0xff] %v7911_v25  ;;  %v7917_v34 = vsub.f32 %v7877_v4, %v9019_v63  ;;  %6203 = vmatprep.subr.bf16.mxu0 %v7911_v25  ;;  %v3352_v63 = vmax.f32 %v7841_v10, 0.0 }
 0x19f   :  { %v7886_v54 = vpop.f32.mrb[14].mxu0  ;;  %v7888_v53 = vpop.f32.mrb[14].mxu1  ;;  %v7920_v36 = vpack.c.bf16 %v4100_v57, %v4096_v14  ;;  %v7926_v24 = vsub.f32 %v3353_v19, %v4100_v57  ;;  %v7931_v32 = vpack.c.bf16 %v4090_v8, %v7792_v40  ;;  %v3354_v14 = vmax.f32 %v7843_v3, 0.0  ;;  %6205 = vmatpush1.bf16.msra.mxu0 %v7805_v38 }
 0x1a0   :  { %v7897_v47 = vpop.f32.mrb[15].mxu0  ;;  %v7899_v50 = vpop.f32.mrb[15].mxu1  ;;  %9122 = vst [vmem:[#allocation18_spill] sm:$0xff] %v7906_v22  ;;  %9123 = vst [vmem:[#allocation19_spill] sm:$0xff] %v7908_v15  ;;  %v9020_v61 = vand.u32 4294901760, %v7908_v15  ;;  %v3359_v30 = vmax.f32 %v7862_v37, 0.0 }
 0x1a1   :  { %9125 = vst [vmem:[#allocation21_spill] sm:$0xff] %v7920_v36  ;;  %9126 = vst [vmem:[#allocation22_spill] sm:$0xff] %v7926_v24  ;;  %v9027_v19 = vand.u32 4294901760, %v7926_v24  ;;  %6299 = vmatprep.subr.bf16.mxu1 %v7931_v32  ;;  %v3402_v8 = vand.u32 4294901760, %v3352_v63  ;;  %v4098_v40 = vand.u32 4294901760, %v3354_v14  ;;  %v3361_v3 = vmax.f32 %v7864_v1, 0.0 }
 0x1a2   :  { %9127 = vst [vmem:[#allocation23_spill] sm:$0xff] %v7931_v32  ;;  %v7939_v44 = vsub.f32 %v7908_v15, %v9020_v61  ;;  %v3360_v10 = vmax.f32 %v7867_v62, 0.0  ;;  %6301 = vmatpush1.bf16.msra.mxu1 %v7809_v0  ;;  %v3408_v57 = vand.u32 4294901760, %v3359_v30  ;;  %v3362_v37 = vmax.f32 %v7869_v20, 0.0 }
 0x1a3   :  { %v7952_v61 = vsub.f32 %v7926_v24, %v9027_v19  ;;  %v7956_v39 = vsub.f32 %v3352_v63, %v3402_v8  ;;  %v7958_v5 = vsub.f32 %v3354_v14, %v4098_v40  ;;  %v4104_v38 = vand.u32 4294901760, %v3361_v3 }
 0x1a4   :  { %v3406_v1 = vand.u32 4294901760, %v3360_v10  ;;  %v7961_v32 = vsub.f32 %v3359_v30, %v3408_v57  ;;  %v4102_v21 = vand.u32 4294901760, %v3362_v37  ;;  %v3367_v25 = vmax.f32 %v7886_v54, 0.0 }
 0x1a5   :  { %v7966_v24 = vsub.f32 %v3361_v3, %v4104_v38  ;;  %v3369_v62 = vmax.f32 %v7888_v53, 0.0  ;;  %v7977_v54 = vpack.c.bf16 %v3402_v8, %v7879_v56  ;;  %v7980_v19 = vpack.c.bf16 %v4098_v40, %v7881_v31 }
 0x1a6   :  { %v7968_v20 = vsub.f32 %v3360_v10, %v3406_v1  ;;  %v9036_v63 = vand.u32 4294901760, %v7961_v32  ;;  %v7971_v14 = vsub.f32 %v3362_v37, %v4102_v21  ;;  %v3412_v4 = vand.u32 4294901760, %v3367_v25 }
 0x1a7   :  { %v9037_v15 = vand.u32 4294901760, %v7966_v24  ;;  %9128 = vst [vmem:[#allocation24_spill] sm:$0xff] %v7977_v54  ;;  %9129 = vst [vmem:[#allocation25_spill] sm:$0xff] %v7980_v19  ;;  %v4108_v0 = vand.u32 4294901760, %v3369_v62  ;;  %6207 = vmatprep.subr.bf16.mxu0 %v7977_v54  ;;  %6303 = vmatprep.subr.bf16.mxu1 %v7980_v19  ;;  %v3368_v31 = vmax.f32 %v7897_v47, 0.0  ;;  %v3370_v56 = vmax.f32 %v7899_v50, 0.0 }
 0x1a8   :  { %v7985_v3 = vsub.f32 %v7961_v32, %v9036_v63  ;;  %v7988_v37 = vpack.c.bf16 %v3412_v4, %v3408_v57  ;;  %v7990_v53 = vsub.f32 %v3367_v25, %v3412_v4  ;;  %6209 = vmatpush1.bf16.msra.mxu0 %v7906_v22  ;;  %6305 = vmatpush1.bf16.msra.mxu1 %v7920_v36  ;;  %v9130_v25 = vand.u32 4294901760, %v7723_v17 }
 0x1a9   :  { %v8000_v8 = vsub.f32 %v7966_v24, %v9037_v15  ;;  %v8011_v40 = vpack.c.bf16 %v4108_v0, %v4104_v38  ;;  %v8013_v63 = vsub.f32 %v3369_v62, %v4108_v0  ;;  %v3410_v15 = vand.u32 4294901760, %v3368_v31 }
 0x1aa   :  { %v9044_v57 = vand.u32 4294901760, %v7990_v53  ;;  %v3488_v47 = vsub.f32 %v7723_v17, %v9130_v25  ;;  %v4106_v4 = vand.u32 4294901760, %v3370_v56  ;;  %v9131_v36 = vand.u32 4294901760, %v7757_v59 }
 0x1ab   :  { %v9047_v25 = vand.u32 4294901760, %v8013_v63  ;;  %v8026_v50 = vsub.f32 %v3368_v31, %v3410_v15  ;;  %v8028_v0 = vpack.c.bf16 %v3410_v15, %v3406_v1  ;;  %v9134_v31 = vand.u32 4294901760, %v7726_v18 }
 0x1ac   :  { %v8018_v30 = vsub.f32 %v7990_v53, %v9044_v57  ;;  %v3489_v10 = vand.u32 4294901760, %v3488_v47  ;;  %v3500_v22 = vsub.f32 %v7757_v59, %v9131_v36  ;;  %v8031_v19 = vsub.f32 %v3370_v56, %v4106_v4 }
 0x1ad   :  { %9132 = vst [vmem:[#allocation26_spill] sm:$0xff] %v8028_v0  ;;  %v8033_v57 = vpack.c.bf16 %v4106_v4, %v4102_v21  ;;  %v8038_v36 = vsub.f32 %v8013_v63, %v9047_v25  ;;  %6211 = vmatprep.subr.bf16.mxu0 %v8028_v0  ;;  %v4184_v15 = vsub.f32 %v7726_v18, %v9134_v31  ;;  %v9135_v1 = vand.u32 4294901760, %v7765_v6 }
 0x1ae   :  { %v3501_v47 = vand.u32 4294901760, %v3500_v22  ;;  %6213 = vmatpush1.bf16.msra.mxu0 %v7988_v37  ;;  %v9136_v4 = vand.u32 4294901760, %v7740_v45  ;;  %v9137_v38 = vand.u32 4294901760, %v7777_v48  ;;  %v9138_v62 = vand.u32 4294901760, %v7745_v46 }
 0x1af   :  { %9133 = vst [vmem:[#allocation27_spill] sm:$0xff] %v8033_v57  ;;  %v4196_v56 = vsub.f32 %v7765_v6, %v9135_v1  ;;  %6307 = vmatprep.subr.bf16.mxu1 %v8033_v57  ;;  %v9139_v31 = vand.u32 4294901760, %v7786_v2  ;;  %v4275_v0 = vand.u32 4294901760, %v8038_v36  ;;  %v4185_v1 = vand.u32 4294901760, %v4184_v15 }
 0x1b0   :  { %v6214_v22 = vpack.c.bf16 %v3501_v47, %v3489_v10  ;;  %v6216_v25 = vpack.c.bf16 %v9137_v38, %v9136_v4  ;;  %6309 = vmatpush1.bf16.msra.mxu1 %v8011_v40  ;;  %v9140_v57 = vand.u32 4294901760, %v7799_v33  ;;  %v9141_v45 = vand.u32 4294901760, %v7871_v11 }
 0x1b1   :  { %v6312_v54 = vpack.c.bf16 %v9139_v31, %v9138_v62  ;;  %v4197_v21 = vand.u32 4294901760, %v4196_v56  ;;  %v9142_v46 = vand.u32 4294901760, %v7814_v58  ;;  %v9143_v38 = vand.u32 4294901760, %v7873_v42  ;;  %3468 = vmatmul.mubr.f32.vlgmr.msra.gmra.mrb[32].mxu0 %v7712_v23 }
 0x1b2   :  { %v3512_v10 = vsub.f32 %v7799_v33, %v9140_v57  ;;  %6215 = vmatprep.subr.bf16.mxu0 %v6214_v22  ;;  %v3524_v48 = vsub.f32 %v7871_v11, %v9141_v45  ;;  %v9144_v47 = vand.u32 4294901760, %v7831_v7  ;;  %v9145_v36 = vand.u32 4294901760, %v7848_v26 }
 0x1b3   :  { %v4208_v2 = vsub.f32 %v7814_v58, %v9142_v46  ;;  %v4220_v62 = vsub.f32 %v7873_v42, %v9143_v38  ;;  %v6310_v56 = vpack.c.bf16 %v4197_v21, %v4185_v1  ;;  %v9146_v22 = vand.u32 4294901760, %v7836_v41  ;;  %6217 = vmatpush1.bf16.msra.mxu0 %v6216_v25  ;;  %4164 = vmatmul.mubr.f32.vlgmr.msra.gmra.mrb[32].mxu1 %v7712_v23 }
 0x1b4   :  { %v6220_v15 = vpack.c.bf16 %v9145_v36, %v9144_v47  ;;  %v3513_v57 = vand.u32 4294901760, %v3512_v10  ;;  %v9147_v4 = vand.u32 4294901760, %v7860_v9  ;;  %v9148_v45 = vand.u32 4294901760, %v7892_v12 }
 0x1b5   :  { %v3525_v7 = vand.u32 4294901760, %v3524_v48  ;;  %v4209_v38 = vand.u32 4294901760, %v4208_v2  ;;  %v4221_v26 = vand.u32 4294901760, %v4220_v62  ;;  %v9149_v21 = vand.u32 4294901760, %v7956_v39  ;;  %6311 = vmatprep.subr.bf16.mxu1 %v6310_v56 }
 0x1b6   :  { %v6316_v31 = vpack.c.bf16 %v9147_v4, %v9146_v22  ;;  %v3536_v46 = vsub.f32 %v7892_v12, %v9148_v45  ;;  %v9150_v41 = vand.u32 4294901760, %v7895_v16  ;;  %v9151_v47 = vand.u32 4294901760, %v7958_v5  ;;  %6313 = vmatpush1.bf16.msra.mxu1 %v6312_v54 }
 0x1b7   :  { %v3548_v1 = vsub.f32 %v7956_v39, %v9149_v21  ;;  %v9152_v25 = vand.u32 4294901760, %v7904_v51  ;;  %v9153_v48 = vand.u32 4294901760, %v7939_v44  ;;  %v9154_v62 = vmov 0.0  }
 0x1b8   :  { %v3537_v10 = vand.u32 4294901760, %v3536_v46  ;;  %v4232_v9 = vsub.f32 %v7895_v16, %v9150_v41  ;;  %v4244_v36 = vsub.f32 %v7958_v5, %v9151_v47  ;;  %3473 = vmatprep.mubr.f32.mxu0 %v9154_v62  ;;  %v6218_v22 = vpack.c.bf16 %v3525_v7, %v3513_v57  ;;  %4169 = vmatprep.mubr.f32.mxu1 %v9154_v62 }
 0x1b9   :  { %v6224_v2 = vpack.c.bf16 %v9153_v48, %v9152_v25  ;;  %v6314_v4 = vpack.c.bf16 %v4221_v26, %v4209_v38  ;;  %v3549_v56 = vand.u32 4294901760, %v3548_v1  ;;  %v9155_v45 = vand.u32 4294901760, %v7917_v34  ;;  %3479 = vmatmul.mubr.f32.gmra.mrb[34].mxu0 %v7735_v43  ;;  %4175 = vmatmul.mubr.f32.gmra.mrb[34].mxu1 %v7735_v43 }
 0x1ba   :  { %v9156_v46 = vand.u32 4294901760, %v7952_v61  ;;  %v4233_v41 = vand.u32 4294901760, %v4232_v9  ;;  %v4245_v47 = vand.u32 4294901760, %v4244_v36  ;;  %v9157_v51 = vand.u32 4294901760, %v7968_v20  ;;  %6219 = vmatprep.subr.bf16.mxu0 %v6218_v22  ;;  %3629 = vmatprep.mubr.f32.mxu0 %v9154_v62 }
 0x1bb   :  { %v9158_v25 = vand.u32 4294901760, %v8026_v50  ;;  %v4263_v57 = vand.u32 4294901760, %v8000_v8  ;;  %6315 = vmatprep.subr.bf16.mxu1 %v6314_v4  ;;  %v6222_v34 = vpack.c.bf16 %v3549_v56, %v3537_v10  ;;  %v9159_v61 = vand.u32 4294901760, %v7971_v14  ;;  %6221 = vmatpush1.bf16.msra.mxu0 %v6220_v15 }
 0x1bc   :  { %v6320_v21 = vpack.c.bf16 %v9156_v46, %v9155_v45  ;;  %v3560_v44 = vsub.f32 %v7968_v20, %v9157_v51  ;;  %v9160_v38 = vand.u32 4294901760, %v8031_v19  ;;  %v6318_v1 = vpack.c.bf16 %v4245_v47, %v4233_v41  ;;  %6317 = vmatpush1.bf16.msra.mxu1 %v6316_v31  ;;  %4325 = vmatprep.mubr.f32.mxu1 %v9154_v62 }
 0x1bd   :  { %v3572_v54 = vsub.f32 %v8026_v50, %v9158_v25  ;;  %v4256_v7 = vsub.f32 %v7971_v14, %v9159_v61  ;;  %v9161_v48 = vand.u32 4294901760, %v7985_v3  ;;  %v9162_v45 = vand.u32 4294901760, %v8018_v30  ;;  %6223 = vmatprep.subr.bf16.mxu0 %v6222_v34 }
 0x1be   :  { %v4268_v26 = vsub.f32 %v8031_v19, %v9160_v38  ;;  %v3561_v9 = vand.u32 4294901760, %v3560_v44  ;;  %v6324_v4 = vpack.c.bf16 %v4275_v0, %v4263_v57  ;;  %v6230_v56 = vpack.c.bf16 %v7757_v59, %v7723_v17  ;;  %6319 = vmatprep.subr.bf16.mxu1 %v6318_v1 }
 0x1bf   :  { %v3573_v36 = vand.u32 4294901760, %v3572_v54  ;;  %v6228_v8 = vpack.c.bf16 %v9162_v45, %v9161_v48  ;;  %v4257_v10 = vand.u32 4294901760, %v4256_v7  ;;  %v6326_v46 = vpack.c.bf16 %v7765_v6, %v7726_v18  ;;  %6225 = vmatpush1.bf16.msra.mxu0 %v6224_v2 }
 0x1c0   :  { %v4269_v22 = vand.u32 4294901760, %v4268_v26  ;;  %v6234_v30 = vpack.c.bf16 %v7871_v11, %v7799_v33  ;;  %v6330_v31 = vpack.c.bf16 %v7873_v42, %v7814_v58  ;;  %v6238_v0 = vpack.c.bf16 %v7956_v39, %v7892_v12  ;;  %6321 = vmatpush1.bf16.msra.mxu1 %v6320_v21 }
 0x1c1   :  { %v6226_v15 = vpack.c.bf16 %v3573_v36, %v3561_v9  ;;  %v6334_v41 = vpack.c.bf16 %v7958_v5, %v7895_v16  ;;  %v6242_v47 = vpack.c.bf16 %v8026_v50, %v7968_v20  ;;  %v6338_v51 = vpack.c.bf16 %v8031_v19, %v7971_v14 }
 0x1c2   :  { %v6322_v3 = vpack.c.bf16 %v4269_v22, %v4257_v10  ;;  %v9163_v44 = vand.u32 4294901760, %v7723_v17  ;;  %v9164_v25 = vand.u32 4294901760, %v7757_v59  ;;  %v9165_v57 = vand.u32 4294901760, %v7726_v18 }
 0x1c3   :  { %v9166_v34 = vand.u32 4294901760, %v7765_v6  ;;  %6227 = vmatprep.subr.bf16.mxu0 %v6226_v15  ;;  %v9167_v2 = vand.u32 4294901760, %v7716_v60  ;;  %v9168_v7 = vand.u32 4294901760, %v7749_v49  ;;  %v9169_v17 = vand.u32 4294901760, %v7718_v35 }
 0x1c4   :  { %v8146_v54 = vpack.c.bf16 %v9164_v25, %v9163_v44  ;;  %v9170_v59 = vand.u32 4294901760, %v7755_v55  ;;  %v9171_v18 = vand.u32 4294901760, %v7799_v33  ;;  %v9172_v6 = vand.u32 4294901760, %v7871_v11  ;;  %6323 = vmatprep.subr.bf16.mxu1 %v6322_v3  ;;  %6229 = vmatpush1.bf16.msra.mxu0 %v6228_v8 }
 0x1c5   :  { %v8152_v61 = vpack.c.bf16 %v9166_v34, %v9165_v57  ;;  %v8158_v38 = vpack.c.bf16 %v9168_v7, %v9167_v2  ;;  %v9173_v21 = vand.u32 4294901760, %v7814_v58  ;;  %v9174_v9 = vand.u32 4294901760, %v7873_v42  ;;  %v9184_v34 = vld [vmem:[#allocation19_spill] sm:$0xff]  ;;  %6325 = vmatpush1.bf16.msra.mxu1 %v6324_v4  ;;  %6231 = vmatprep.subr.bf16.mxu0 %v6230_v56 }
 0x1c6   :  { %v8164_v26 = vpack.c.bf16 %v9170_v59, %v9169_v17  ;;  %v8170_v1 = vpack.c.bf16 %v9172_v6, %v9171_v18  ;;  %v9175_v48 = vand.u32 4294901760, %v7794_v27  ;;  %v9176_v45 = vand.u32 4294901760, %v7807_v13  ;;  %v9186_v17 = vld [vmem:[#allocation17_spill] sm:$0xff]  ;;  %v9188_v18 = vld [vmem:[#allocation22_spill] sm:$0xff]  ;;  %6327 = vmatprep.subr.bf16.mxu1 %v6326_v46  ;;  %v9201_v4 = vld [vmem:[#allocation7_spill] sm:$0xff] }
 0x1c7   :  { %v8176_v36 = vpack.c.bf16 %v9174_v9, %v9173_v21  ;;  %v9177_v22 = vand.u32 4294901760, %v7796_v28  ;;  %v9178_v33 = vand.u32 4294901760, %v7816_v29  ;;  %v9179_v15 = vand.u32 4294901760, %v7892_v12  ;;  %v9212_v46 = vld [vmem:[#allocation12_spill] sm:$0xff] }
 0x1c8   :  { %v8182_v10 = vpack.c.bf16 %v9176_v45, %v9175_v48  ;;  %v9180_v58 = vand.u32 4294901760, %v7956_v39  ;;  %v9181_v42 = vand.u32 4294901760, %v7895_v16  ;;  %v9182_v44 = vand.u32 4294901760, %v7958_v5 }
 0x1c9   :  { %v8188_v11 = vpack.c.bf16 %v9178_v33, %v9177_v22  ;;  %v9183_v57 = vand.u32 4294901760, %v7875_v52  ;;  %v9185_v2 = vand.u32 4294901760, %v9184_v34  ;;  %v9187_v59 = vand.u32 4294901760, %v9186_v17 }
 0x1ca   :  { %v8194_v3 = vpack.c.bf16 %v9180_v58, %v9179_v15  ;;  %v8200_v25 = vpack.c.bf16 %v9182_v44, %v9181_v42  ;;  %v9189_v12 = vand.u32 4294901760, %v9188_v18  ;;  %v9190_v39 = vand.u32 4294901760, %v7968_v20  ;;  %v9223_v58 = vld [vmem:[#allocation27_spill] sm:$0xff]  ;;  %v9224_v42 = vld [vmem:[#allocation8_spill] sm:$0xff]  ;;  %v9225_v44 = vld [vmem:[#allocation10_spill] sm:$0xff] }
 0x1cb   :  { %v8206_v7 = vpack.c.bf16 %v9185_v2, %v9183_v57  ;;  %v9191_v16 = vand.u32 4294901760, %v8026_v50  ;;  %v9192_v5 = vand.u32 4294901760, %v7971_v14  ;;  %v9193_v9 = vand.u32 4294901760, %v8031_v19  ;;  %v9198_v14 = vld [vmem:[#allocation5_spill] sm:$0xff] }
 0x1cc   :  { %v8212_v6 = vpack.c.bf16 %v9189_v12, %v9187_v59  ;;  %v9194_v45 = vand.u32 4294901760, %v7961_v32  ;;  %v9195_v22 = vand.u32 4294901760, %v7990_v53  ;;  %v9196_v15 = vand.u32 4294901760, %v7966_v24  ;;  %3631 = vmatmul.mubr.f32.vlgmr.msra.gmra.mrb[32].mxu0 %v9198_v14  ;;  %4327 = vmatmul.mubr.f32.vlgmr.msra.gmra.mrb[32].mxu1 %v9198_v14 }
 0x1cd   :  { %v8218_v21 = vpack.c.bf16 %v9191_v16, %v9190_v39  ;;  %v8224_v48 = vpack.c.bf16 %v9193_v9, %v9192_v5  ;;  %v9197_v20 = vand.u32 4294901760, %v8013_v63  ;;  %v9199_v19 = vpack.c.bf16 %v7749_v49, %v7716_v60  ;;  %3636 = vmatprep.mubr.f32.mxu0 %v9154_v62  ;;  %4332 = vmatprep.mubr.f32.mxu1 %v9154_v62 }
 0x1ce   :  { %v8230_v33 = vpack.c.bf16 %v9195_v22, %v9194_v45  ;;  %v9200_v8 = vpack.c.bf16 %v7755_v55, %v7718_v35  ;;  %v9202_v56 = vpack.c.bf16 %v7807_v13, %v7794_v27  ;;  %v9203_v60 = vpack.c.bf16 %v7816_v29, %v7796_v28  ;;  %v9208_v13 = vld [vmem:[#allocation13_spill] sm:$0xff]  ;;  %v9209_v27 = vld [vmem:[#allocation16_spill] sm:$0xff]  ;;  %v9211_v28 = vld [vmem:[#allocation11_spill] sm:$0xff] }
 0x1cf   :  { %v8236_v50 = vpack.c.bf16 %v9197_v20, %v9196_v15  ;;  %6233 = vmatpush1.bf16.msra.mxu0 %v9199_v19  ;;  %v9204_v35 = vpack.c.bf16 %v9184_v34, %v7875_v52  ;;  %v9205_v49 = vpack.c.bf16 %v9188_v18, %v9186_v17  ;;  %v9206_v55 = vpack.c.bf16 %v7990_v53, %v7961_v32  ;;  %v9210_v52 = vld [vmem:[#allocation6_spill] sm:$0xff]  ;;  %v9214_v32 = vld [vmem:[#allocation23_spill] sm:$0xff] }
 0x1d0   :  { %6329 = vmatpush1.bf16.msra.mxu1 %v9200_v8  ;;  %6235 = vmatprep.subr.bf16.mxu0 %v6234_v30  ;;  %v9207_v29 = vpack.c.bf16 %v8013_v63, %v7966_v24  ;;  %v9213_v30 = vld [vmem:[#allocation20_spill] sm:$0xff]  ;;  %v9215_v24 = vld [vmem:[#allocation9_spill] sm:$0xff]  ;;  %v9216_v63 = vld [vmem:[#allocation14_spill] sm:$0xff] }
 0x1d1   :  { %6331 = vmatprep.subr.bf16.mxu1 %v6330_v31  ;;  %3638 = vmatmul.mubr.f32.gmra.mrb[34].mxu0 %v9201_v4  ;;  %v9217_v53 = vld [vmem:[#allocation15_spill] sm:$0xff]  ;;  %v9218_v31 = vld [vmem:[#allocation24_spill] sm:$0xff] }
 0x1d2   :  { %4334 = vmatmul.mubr.f32.gmra.mrb[34].mxu1 %v9201_v4  ;;  %3740 = vmatprep.mubr.f32.mxu0 %v9154_v62 }
 0x1d3   :  { %6237 = vmatpush1.bf16.msra.mxu0 %v9202_v56  ;;  %4436 = vmatprep.mubr.f32.mxu1 %v9154_v62 }
 0x1d4   :  { %6333 = vmatpush1.bf16.msra.mxu1 %v9203_v60  ;;  %6239 = vmatprep.subr.bf16.mxu0 %v6238_v0  ;;  %v9219_v0 = vld [vmem:[#allocation25_spill] sm:$0xff] }
 0x1d5   :  { %6335 = vmatprep.subr.bf16.mxu1 %v6334_v41  ;;  %v9220_v41 = vld [vmem:[#allocation18_spill] sm:$0xff] }
 0x1d7   :  { %6241 = vmatpush1.bf16.msra.mxu0 %v9204_v35 }
 0x1d8   :  { %6337 = vmatpush1.bf16.msra.mxu1 %v9205_v49  ;;  %6243 = vmatprep.subr.bf16.mxu0 %v6242_v47  ;;  %v9221_v47 = vld [vmem:[#allocation21_spill] sm:$0xff] }
 0x1d9   :  { %6339 = vmatprep.subr.bf16.mxu1 %v6338_v51  ;;  %v9222_v51 = vld [vmem:[#allocation26_spill] sm:$0xff] }
 0x1db   :  { %6245 = vmatpush1.bf16.msra.mxu0 %v9206_v55 }
 0x1dc   :  { %6341 = vmatpush1.bf16.msra.mxu1 %v9207_v29  ;;  %6247 = vmatprep.subr.bf16.mxu0 %v9208_v13 }
 0x1dd   :  { %6343 = vmatprep.subr.bf16.mxu1 %v9209_v27 }
 0x1de   :  { %3743 = vmatmul.mubr.f32.vlgmr.msra.gmra.mrb[32].mxu0 %v9210_v52 }
 0x1df   :  { %6249 = vmatpush1.bf16.msra.mxu0 %v9211_v28  ;;  %4439 = vmatmul.mubr.f32.vlgmr.msra.gmra.mrb[32].mxu1 %v9210_v52 }
 0x1e0   :  { %6345 = vmatpush1.bf16.msra.mxu1 %v9212_v46  ;;  %6251 = vmatprep.subr.bf16.mxu0 %v9213_v30 }
 0x1e1   :  { %6347 = vmatprep.subr.bf16.mxu1 %v9214_v32  ;;  %3748 = vmatprep.mubr.f32.mxu0 %v9154_v62 }
 0x1e2   :  { %4444 = vmatprep.mubr.f32.mxu1 %v9154_v62  ;;  %3751 = vmatmul.mubr.f32.gmra.mrb[34].mxu0 %v9215_v24 }
 0x1e3   :  { %6253 = vmatpush1.bf16.msra.mxu0 %v9216_v63  ;;  %4447 = vmatmul.mubr.f32.gmra.mrb[34].mxu1 %v9215_v24 }
 0x1e4   :  { %6349 = vmatpush1.bf16.msra.mxu1 %v9217_v53  ;;  %6255 = vmatprep.subr.bf16.mxu0 %v9218_v31 }
 0x1e5   :  { %6351 = vmatprep.subr.bf16.mxu1 %v9219_v0  ;;  %3837 = vmatprep.mubr.f32.mxu0 %v9154_v62 }
 0x1e6   :  { %4533 = vmatprep.mubr.f32.mxu1 %v9154_v62 }
 0x1e7   :  { %6257 = vmatpush1.bf16.msra.mxu0 %v9220_v41 }
 0x1e8   :  { %6353 = vmatpush1.bf16.msra.mxu1 %v9221_v47  ;;  %6259 = vmatprep.subr.bf16.mxu0 %v9222_v51 }
 0x1e9   :  { %6355 = vmatprep.subr.bf16.mxu1 %v9223_v58 }
 0x1eb   :  { %6261 = vmatpush1.bf16.msra.mxu0 %v7988_v37 }
 0x1ec   :  { %6357 = vmatpush1.bf16.msra.mxu1 %v8011_v40  ;;  %6263 = vmatprep.subr.bf16.mxu0 %v8146_v54 }
 0x1ed   :  { %6359 = vmatprep.subr.bf16.mxu1 %v8152_v61 }
 0x1ee   :  { %3841 = vmatmul.mubr.f32.vlgmr.msra.gmra.mrb[32].mxu0 %v9224_v42 }
 0x1ef   :  { %6265 = vmatpush1.bf16.msra.mxu0 %v8158_v38  ;;  %4537 = vmatmul.mubr.f32.vlgmr.msra.gmra.mrb[32].mxu1 %v9224_v42 }
 0x1f0   :  { %6361 = vmatpush1.bf16.msra.mxu1 %v8164_v26  ;;  %6267 = vmatprep.subr.bf16.mxu0 %v8170_v1 }
 0x1f1   :  { %6363 = vmatprep.subr.bf16.mxu1 %v8176_v36  ;;  %3846 = vmatprep.mubr.f32.mxu0 %v9154_v62 }
 0x1f2   :  { %4542 = vmatprep.mubr.f32.mxu1 %v9154_v62  ;;  %3850 = vmatmul.mubr.f32.gmra.mrb[34].mxu0 %v9225_v44 }
 0x1f3   :  { %6269 = vmatpush1.bf16.msra.mxu0 %v8182_v10  ;;  %4546 = vmatmul.mubr.f32.gmra.mrb[34].mxu1 %v9225_v44 }
 0x1f4   :  { %6365 = vmatpush1.bf16.msra.mxu1 %v8188_v11  ;;  %6271 = vmatprep.subr.bf16.mxu0 %v8194_v3 }
 0x1f5   :  { %6367 = vmatprep.subr.bf16.mxu1 %v8200_v25  ;;  %3968 = vmatprep.mubr.f32.mxu0 %v9154_v62 }
 0x1f6   :  { %4664 = vmatprep.mubr.f32.mxu1 %v9154_v62 }
 0x1f7   :  { %6273 = vmatpush1.bf16.msra.mxu0 %v8206_v7 }
 0x1f8   :  { %6369 = vmatpush1.bf16.msra.mxu1 %v8212_v6  ;;  %6275 = vmatprep.subr.bf16.mxu0 %v8218_v21 }
 0x1f9   :  { %6371 = vmatprep.subr.bf16.mxu1 %v8224_v48 }
 0x1fb   :  { %6277 = vmatpush1.bf16.msra.mxu0 %v8230_v33 }
 0x1fc   :  { %6373 = vmatpush1.bf16.msra.mxu1 %v8236_v50  ;;  %6279 = vmatprep.subr.bf16.mxu0 %v9208_v13 }
 0x1fd   :  { %6375 = vmatprep.subr.bf16.mxu1 %v9209_v27 }
 0x1fe   :  { %3970 = vmatmul.mubr.f32.vlgmr.msra.gmra.mrb[32].mxu0 %v9198_v14 }
 0x1ff   :  { %6281 = vmatpush1.bf16.msra.mxu0 %v9211_v28  ;;  %4666 = vmatmul.mubr.f32.vlgmr.msra.gmra.mrb[32].mxu1 %v9198_v14 }
 0x200   :  { %6377 = vmatpush1.bf16.msra.mxu1 %v9212_v46  ;;  %6283 = vmatprep.subr.bf16.mxu0 %v9213_v30 }
 0x201   :  { %6379 = vmatprep.subr.bf16.mxu1 %v9214_v32  ;;  %3975 = vmatprep.mubr.f32.mxu0 %v9154_v62 }
 0x202   :  { %4671 = vmatprep.mubr.f32.mxu1 %v9154_v62  ;;  %3977 = vmatmul.mubr.f32.gmra.mrb[34].mxu0 %v9201_v4 }
 0x203   :  { %6285 = vmatpush1.bf16.msra.mxu0 %v9216_v63  ;;  %4673 = vmatmul.mubr.f32.gmra.mrb[34].mxu1 %v9201_v4 }
 0x204   :  { %6381 = vmatpush1.bf16.msra.mxu1 %v9217_v53  ;;  %6287 = vmatprep.subr.bf16.mxu0 %v9218_v31 }
 0x205   :  { %6383 = vmatprep.subr.bf16.mxu1 %v9219_v0  ;;  %4063 = vmatprep.mubr.f32.mxu0 %v9154_v62 }
 0x206   :  { %4759 = vmatprep.mubr.f32.mxu1 %v9154_v62 }
 0x207   :  { %6289 = vmatpush1.bf16.msra.mxu0 %v9220_v41 }
 0x208   :  { %6385 = vmatpush1.bf16.msra.mxu1 %v9221_v47  ;;  %6291 = vmatprep.subr.bf16.mxu0 %v9222_v51 }
 0x209   :  { %6387 = vmatprep.subr.bf16.mxu1 %v9223_v58 }
 0x20b   :  { %6293 = vmatpush1.bf16.msra.mxu0 %v7988_v37 }
 0x20c   :  { %6389 = vmatpush1.bf16.msra.mxu1 %v8011_v40 }
 0x20e   :  { %4065 = vmatmul.mubr.f32.vlgmr.msra.gmra.mrb[32].mxu0 %v9198_v14 }
 0x20f   :  { %4761 = vmatmul.mubr.f32.vlgmr.msra.gmra.mrb[32].mxu1 %v9198_v14  ;;  %4070 = vmatprep.mubr.f32.mxu0 %v9154_v62 }
 0x210   :  { %4766 = vmatprep.mubr.f32.mxu1 %v9154_v62 }
 0x212   :  { %4072 = vmatmul.mubr.f32.gmra.mrb[34].mxu0 %v9201_v4 }
 0x213   :  { %4768 = vmatmul.mubr.f32.gmra.mrb[34].mxu1 %v9201_v4  ;;  %4854 = vmatprep.mubr.f32.mxu0 %v9154_v62 }
 0x214   :  { %5550 = vmatprep.mubr.f32.mxu1 %v9154_v62 }
 0x243   :  { %v2449_v54 = vpop.f32.mrb[16].mxu0  ;;  %v3257_v37 = vpop.f32.mrb[16].mxu1 }
 0x244   :  { %v3315_v61 = vmax.f32 %v2449_v54, 0.0  ;;  %v3317_v40 = vmax.f32 %v3257_v37, 0.0  ;;  %v2451_v38 = vpop.f32.mrb[17].mxu0  ;;  %v3259_v26 = vpop.f32.mrb[17].mxu1 }
 0x245   :  { %v3316_v1 = vmax.f32 %v2451_v38, 0.0  ;;  %v3318_v36 = vmax.f32 %v3259_v26, 0.0 }
 0x246   :  { %v4776_v10 = vand.u32 4294901760, %v3315_v61  ;;  %v5472_v11 = vand.u32 4294901760, %v3317_v40 }
 0x247   :  { %v8350_v3 = vand.u32 4294901760, %v3316_v1  ;;  %v8352_v25 = vand.u32 4294901760, %v3318_v36  ;;  %v2456_v57 = vpop.f32.mrb[18].mxu0  ;;  %v3264_v34 = vpop.f32.mrb[18].mxu1 }
 0x248   :  { %v8354_v2 = vsub.f32 %v3315_v61, %v4776_v10  ;;  %v8356_v7 = vsub.f32 %v3317_v40, %v5472_v11  ;;  %v3323_v17 = vmax.f32 %v2456_v57, 0.0  ;;  %v3325_v59 = vmax.f32 %v3264_v34, 0.0  ;;  %v2458_v18 = vpop.f32.mrb[19].mxu0  ;;  %v3266_v12 = vpop.f32.mrb[19].mxu1 }
 0x249   :  { %v8359_v6 = vsub.f32 %v3316_v1, %v8350_v3  ;;  %v8362_v39 = vsub.f32 %v3318_v36, %v8352_v25  ;;  %v3324_v16 = vmax.f32 %v2458_v18, 0.0  ;;  %v3326_v21 = vmax.f32 %v3266_v12, 0.0 }
 0x24a   :  { %v9057_v5 = vand.u32 4294901760, %v8354_v2  ;;  %v9053_v9 = vand.u32 4294901760, %v8356_v7  ;;  %v4780_v48 = vand.u32 4294901760, %v3323_v17  ;;  %v5476_v45 = vand.u32 4294901760, %v3325_v59 }
 0x24b   :  { %v4778_v33 = vand.u32 4294901760, %v3324_v16  ;;  %v5474_v15 = vand.u32 4294901760, %v3326_v21  ;;  %v2463_v20 = vpop.f32.mrb[20].mxu0  ;;  %v3271_v50 = vpop.f32.mrb[20].mxu1 }
 0x24c   :  { %v8370_v19 = vsub.f32 %v8354_v2, %v9057_v5  ;;  %v8375_v8 = vsub.f32 %v8356_v7, %v9053_v9  ;;  %v8377_v56 = vpack.c.bf16 %v4780_v48, %v4776_v10  ;;  %v8379_v60 = vsub.f32 %v3323_v17, %v4780_v48  ;;  %v2465_v35 = vpop.f32.mrb[21].mxu0  ;;  %v3273_v49 = vpop.f32.mrb[21].mxu1 }
 0x24d   :  { %v8382_v29 = vpack.c.bf16 %v5476_v45, %v5472_v11  ;;  %v8384_v13 = vsub.f32 %v3325_v59, %v5476_v45  ;;  %v8386_v27 = vsub.f32 %v3324_v16, %v4778_v33  ;;  %v8392_v32 = vsub.f32 %v3326_v21, %v5474_v15 }
 0x24e   :  { %9226 = vst [vmem:[#allocation19_spill] sm:$0xff] %v8377_v56  ;;  %v9056_v46 = vand.u32 4294901760, %v8379_v60  ;;  %v3331_v58 = vmax.f32 %v2463_v20, 0.0  ;;  %v3333_v54 = vmax.f32 %v3271_v50, 0.0  ;;  %v3332_v37 = vmax.f32 %v2465_v35, 0.0 }
 0x24f   :  { %9227 = vst [vmem:[#allocation17_spill] sm:$0xff] %v8382_v29  ;;  %v9052_v53 = vand.u32 4294901760, %v8384_v13  ;;  %v2470_v41 = vpop.f32.mrb[22].mxu0  ;;  %v3278_v47 = vpop.f32.mrb[22].mxu1  ;;  %v3334_v26 = vmax.f32 %v3273_v49, 0.0  ;;  %v8427_v50 = vpack.c.bf16 %v4778_v33, %v8350_v3 }
 0x250   :  { %v8402_v51 = vsub.f32 %v8379_v60, %v9056_v46  ;;  %v8404_v61 = vpop.f32.mrb[23].mxu0  ;;  %v8406_v40 = vpop.f32.mrb[23].mxu1  ;;  %v3339_v1 = vmax.f32 %v2470_v41, 0.0  ;;  %v3341_v36 = vmax.f32 %v3278_v47, 0.0  ;;  %v4784_v11 = vand.u32 4294901760, %v3331_v58 }
 0x251   :  { %v8411_v38 = vsub.f32 %v8384_v13, %v9052_v53  ;;  %v5480_v57 = vand.u32 4294901760, %v3333_v54  ;;  %v8414_v34 = vand.u32 4294901760, %v3332_v37  ;;  %v8417_v59 = vand.u32 4294901760, %v3334_v26  ;;  %9228 = vst [vmem:[#allocation22_spill] sm:$0xff] %v8427_v50  ;;  %6391 = vmatprep.subr.bf16.mxu0 %v8427_v50 }
 0x252   :  { %v4788_v18 = vand.u32 4294901760, %v3339_v1  ;;  %v5484_v12 = vand.u32 4294901760, %v3341_v36  ;;  %v8419_v48 = vsub.f32 %v3331_v58, %v4784_v11  ;;  %6393 = vmatpush1.bf16.msra.mxu0 %v8377_v56 }
 0x253   :  { %v2477_v16 = vpop.f32.mrb[24].mxu0  ;;  %v3285_v21 = vpop.f32.mrb[24].mxu1  ;;  %v8421_v45 = vsub.f32 %v3333_v54, %v5480_v57  ;;  %v8424_v20 = vsub.f32 %v3332_v37, %v8414_v34  ;;  %v8439_v37 = vsub.f32 %v3334_v26, %v8417_v59 }
 0x254   :  { %v2479_v35 = vpop.f32.mrb[25].mxu0  ;;  %v3287_v49 = vpop.f32.mrb[25].mxu1  ;;  %v8430_v47 = vpack.c.bf16 %v4788_v18, %v4784_v11  ;;  %v8432_v31 = vsub.f32 %v3339_v1, %v4788_v18  ;;  %v8434_v30 = vpack.c.bf16 %v5484_v12, %v5480_v57  ;;  %v9054_v58 = vand.u32 4294901760, %v8419_v48 }
 0x255   :  { %v9055_v54 = vand.u32 4294901760, %v8421_v45  ;;  %v8441_v53 = vsub.f32 %v3341_v36, %v5484_v12  ;;  %v8449_v11 = vpack.c.bf16 %v5474_v15, %v8352_v25  ;;  %v3347_v46 = vmax.f32 %v2477_v16, 0.0 }
 0x256   :  { %9229 = vst [vmem:[#allocation13_spill] sm:$0xff] %v8430_v47  ;;  %9230 = vst [vmem:[#allocation16_spill] sm:$0xff] %v8434_v30  ;;  %v9058_v33 = vand.u32 4294901760, %v8432_v31  ;;  %v8455_v26 = vsub.f32 %v8419_v48, %v9054_v58  ;;  %v3340_v58 = vmax.f32 %v8404_v61, 0.0  ;;  %v3349_v41 = vmax.f32 %v3285_v21, 0.0 }
 0x257   :  { %9231 = vst [vmem:[#allocation11_spill] sm:$0xff] %v8449_v11  ;;  %v2484_v57 = vpop.f32.mrb[26].mxu0  ;;  %v3292_v18 = vpop.f32.mrb[26].mxu1  ;;  %v8460_v36 = vsub.f32 %v8421_v45, %v9055_v54  ;;  %v9059_v12 = vand.u32 4294901760, %v8441_v53  ;;  %6487 = vmatprep.subr.bf16.mxu1 %v8449_v11  ;;  %v3342_v54 = vmax.f32 %v8406_v40, 0.0  ;;  %v4792_v61 = vand.u32 4294901760, %v3347_v46 }
 0x258   :  { %v8465_v15 = vpop.f32.mrb[27].mxu0  ;;  %v8467_v1 = vpop.f32.mrb[27].mxu1  ;;  %v8472_v9 = vsub.f32 %v8432_v31, %v9058_v33  ;;  %6489 = vmatpush1.bf16.msra.mxu1 %v8382_v29  ;;  %v4786_v63 = vand.u32 4294901760, %v3340_v58  ;;  %v5488_v25 = vand.u32 4294901760, %v3349_v41  ;;  %v3348_v5 = vmax.f32 %v2479_v35, 0.0 }
 0x259   :  { %v8484_v33 = vsub.f32 %v8441_v53, %v9059_v12  ;;  %v5482_v17 = vand.u32 4294901760, %v3342_v54  ;;  %v3350_v3 = vmax.f32 %v3287_v49, 0.0  ;;  %v8499_v0 = vsub.f32 %v3347_v46, %v4792_v61 }
 0x25a   :  { %v8495_v55 = vsub.f32 %v3340_v58, %v4786_v63  ;;  %v3355_v22 = vmax.f32 %v2484_v57, 0.0  ;;  %v8501_v44 = vsub.f32 %v3349_v41, %v5488_v25  ;;  %v8503_v42 = vand.u32 4294901760, %v3348_v5 }
 0x25b   :  { %v8486_v28 = vpop.f32.mrb[28].mxu0  ;;  %v8488_v40 = vpop.f32.mrb[28].mxu1  ;;  %v8497_v12 = vsub.f32 %v3342_v54, %v5482_v17  ;;  %9232 = vst [vmem:[#allocation12_spill] sm:$0xff] %v8499_v0  ;;  %v8505_v24 = vand.u32 4294901760, %v3350_v3  ;;  %v3357_v16 = vmax.f32 %v3292_v18, 0.0  ;;  %v9074_v29 = vand.u32 4294901760, %v8499_v0 }
 0x25c   :  { %v8491_v10 = vpop.f32.mrb[29].mxu0  ;;  %v8493_v21 = vpop.f32.mrb[29].mxu1  ;;  %9233 = vst [vmem:[#allocation20_spill] sm:$0xff] %v8501_v44  ;;  %v4796_v58 = vand.u32 4294901760, %v3355_v22  ;;  %v8514_v54 = vsub.f32 %v3348_v5, %v8503_v42  ;;  %v8533_v5 = vpack.c.bf16 %v4786_v63, %v8414_v34  ;;  %v9237_v50 = vand.u32 4294901760, %v8501_v44 }
 0x25d   :  { %v8517_v41 = vsub.f32 %v3350_v3, %v8505_v24  ;;  %v5492_v57 = vand.u32 4294901760, %v3357_v16  ;;  %v8526_v35 = vsub.f32 %v8499_v0, %v9074_v29  ;;  %v3356_v14 = vmax.f32 %v8465_v15, 0.0 }
 0x25e   :  { %v8528_v49 = vpack.c.bf16 %v4796_v58, %v4792_v61  ;;  %v8530_v11 = vsub.f32 %v3355_v22, %v4796_v58  ;;  %9236 = vst [vmem:[#allocation15_spill] sm:$0xff] %v8533_v5  ;;  %v8541_v4 = vsub.f32 %v8501_v44, %v9237_v50  ;;  %6395 = vmatprep.subr.bf16.mxu0 %v8533_v5  ;;  %v3363_v63 = vmax.f32 %v8486_v28, 0.0 }
 0x25f   :  { %v8510_v56 = vpop.f32.mrb[30].mxu0  ;;  %v8544_v29 = vpack.c.bf16 %v5492_v57, %v5488_v25  ;;  %v8550_v34 = vsub.f32 %v3357_v16, %v5492_v57  ;;  %v8555_v50 = vpack.c.bf16 %v5482_v17, %v8417_v59  ;;  %v3358_v25 = vmax.f32 %v8467_v1, 0.0  ;;  %6397 = vmatpush1.bf16.msra.mxu0 %v8430_v47 }
 0x260   :  { %v8519_v52 = vpop.f32.mrb[30].mxu1  ;;  %v8521_v18 = vpop.f32.mrb[31].mxu0  ;;  %9234 = vst [vmem:[#allocation23_spill] sm:$0xff] %v8528_v49  ;;  %9235 = vst [vmem:[#allocation14_spill] sm:$0xff] %v8530_v11  ;;  %v9075_v22 = vand.u32 4294901760, %v8530_v11  ;;  %v4794_v17 = vand.u32 4294901760, %v3356_v14 }
 0x261   :  { %v8535_v46 = vpop.f32.mrb[31].mxu1  ;;  %9238 = vst [vmem:[#allocation24_spill] sm:$0xff] %v8544_v29  ;;  %9239 = vst [vmem:[#allocation25_spill] sm:$0xff] %v8550_v34  ;;  %v9084_v16 = vand.u32 4294901760, %v8550_v34  ;;  %6491 = vmatprep.subr.bf16.mxu1 %v8555_v50  ;;  %v5490_v59 = vand.u32 4294901760, %v3358_v25  ;;  %v3365_v1 = vmax.f32 %v8488_v40, 0.0 }
 0x262   :  { %9240 = vst [vmem:[#allocation18_spill] sm:$0xff] %v8555_v50  ;;  %v8563_v61 = vsub.f32 %v8530_v11, %v9075_v22  ;;  %v3364_v15 = vmax.f32 %v8491_v10, 0.0  ;;  %6493 = vmatpush1.bf16.msra.mxu1 %v8434_v30  ;;  %v4800_v57 = vand.u32 4294901760, %v3363_v63  ;;  %v3366_v28 = vmax.f32 %v8493_v21, 0.0 }
 0x263   :  { %v8576_v22 = vsub.f32 %v8550_v34, %v9084_v16  ;;  %v8580_v3 = vsub.f32 %v3356_v14, %v4794_v17  ;;  %v8582_v47 = vsub.f32 %v3358_v25, %v5490_v59  ;;  %v5496_v50 = vand.u32 4294901760, %v3365_v1 }
 0x264   :  { %v4798_v40 = vand.u32 4294901760, %v3364_v15  ;;  %v8585_v5 = vsub.f32 %v3363_v63, %v4800_v57  ;;  %v5494_v58 = vand.u32 4294901760, %v3366_v28  ;;  %v3371_v44 = vmax.f32 %v8510_v56, 0.0 }
 0x265   :  { %v8590_v34 = vsub.f32 %v3365_v1, %v5496_v50  ;;  %v3373_v10 = vmax.f32 %v8519_v52, 0.0  ;;  %v8601_v56 = vpack.c.bf16 %v4794_v17, %v8503_v42  ;;  %v8604_v16 = vpack.c.bf16 %v5490_v59, %v8505_v24 }
 0x266   :  { %v8592_v21 = vsub.f32 %v3364_v15, %v4798_v40  ;;  %v9093_v14 = vand.u32 4294901760, %v8585_v5  ;;  %v8595_v25 = vsub.f32 %v3366_v28, %v5494_v58  ;;  %v4804_v11 = vand.u32 4294901760, %v3371_v44 }
 0x267   :  { %v9094_v0 = vand.u32 4294901760, %v8590_v34  ;;  %9241 = vst [vmem:[#allocation21_spill] sm:$0xff] %v8601_v56  ;;  %9242 = vst [vmem:[#allocation26_spill] sm:$0xff] %v8604_v16  ;;  %v5500_v30 = vand.u32 4294901760, %v3373_v10  ;;  %6399 = vmatprep.subr.bf16.mxu0 %v8601_v56  ;;  %6495 = vmatprep.subr.bf16.mxu1 %v8604_v16  ;;  %v3372_v24 = vmax.f32 %v8521_v18, 0.0  ;;  %v3374_v42 = vmax.f32 %v8535_v46, 0.0 }
 0x268   :  { %v8609_v1 = vsub.f32 %v8585_v5, %v9093_v14  ;;  %v8612_v28 = vpack.c.bf16 %v4804_v11, %v4800_v57  ;;  %v8614_v52 = vsub.f32 %v3371_v44, %v4804_v11  ;;  %6401 = vmatpush1.bf16.msra.mxu0 %v8528_v49  ;;  %6497 = vmatpush1.bf16.msra.mxu1 %v8544_v29  ;;  %v9243_v11 = vand.u32 4294901760, %v8359_v6 }
 0x269   :  { %v8624_v17 = vsub.f32 %v8590_v34, %v9094_v0  ;;  %v8635_v59 = vpack.c.bf16 %v5500_v30, %v5496_v50  ;;  %v8637_v14 = vsub.f32 %v3373_v10, %v5500_v30  ;;  %v4802_v0 = vand.u32 4294901760, %v3372_v24 }
 0x26a   :  { %v9101_v57 = vand.u32 4294901760, %v8614_v52  ;;  %v4880_v18 = vsub.f32 %v8359_v6, %v9243_v11  ;;  %v5498_v44 = vand.u32 4294901760, %v3374_v42  ;;  %v9244_v29 = vand.u32 4294901760, %v8386_v27 }
 0x26b   :  { %v9104_v11 = vand.u32 4294901760, %v8637_v14  ;;  %v8650_v46 = vsub.f32 %v3372_v24, %v4802_v0  ;;  %v8652_v30 = vpack.c.bf16 %v4802_v0, %v4798_v40  ;;  %v9247_v24 = vand.u32 4294901760, %v8362_v39 }
 0x26c   :  { %v8642_v63 = vsub.f32 %v8614_v52, %v9101_v57  ;;  %v4881_v15 = vand.u32 4294901760, %v4880_v18  ;;  %v4892_v49 = vsub.f32 %v8386_v27, %v9244_v29  ;;  %v8655_v16 = vsub.f32 %v3374_v42, %v5498_v44 }
 0x26d   :  { %9245 = vst [vmem:[#allocation27_spill] sm:$0xff] %v8652_v30  ;;  %v8657_v57 = vpack.c.bf16 %v5498_v44, %v5494_v58  ;;  %v8662_v29 = vsub.f32 %v8637_v14, %v9104_v11  ;;  %6403 = vmatprep.subr.bf16.mxu0 %v8652_v30  ;;  %v5576_v0 = vsub.f32 %v8362_v39, %v9247_v24  ;;  %v9248_v40 = vand.u32 4294901760, %v8392_v32 }
 0x26e   :  { %v4893_v18 = vand.u32 4294901760, %v4892_v49  ;;  %6405 = vmatpush1.bf16.msra.mxu0 %v8612_v28  ;;  %v9249_v44 = vand.u32 4294901760, %v8370_v19  ;;  %v9250_v50 = vand.u32 4294901760, %v8402_v51  ;;  %v9251_v10 = vand.u32 4294901760, %v8375_v8 }
 0x26f   :  { %9246 = vst [vmem:[#allocation28_spill] sm:$0xff] %v8657_v57  ;;  %v5588_v42 = vsub.f32 %v8392_v32, %v9248_v40  ;;  %6499 = vmatprep.subr.bf16.mxu1 %v8657_v57  ;;  %v9252_v24 = vand.u32 4294901760, %v8411_v38  ;;  %v5667_v30 = vand.u32 4294901760, %v8662_v29  ;;  %v5577_v40 = vand.u32 4294901760, %v5576_v0 }
 0x270   :  { %v6406_v49 = vpack.c.bf16 %v4893_v18, %v4881_v15  ;;  %v6408_v11 = vpack.c.bf16 %v9250_v50, %v9249_v44  ;;  %6501 = vmatpush1.bf16.msra.mxu1 %v8635_v59  ;;  %v9253_v57 = vand.u32 4294901760, %v8424_v20  ;;  %v9254_v19 = vand.u32 4294901760, %v8495_v55 }
 0x271   :  { %v6504_v56 = vpack.c.bf16 %v9252_v24, %v9251_v10  ;;  %v5589_v58 = vand.u32 4294901760, %v5588_v42  ;;  %v9255_v8 = vand.u32 4294901760, %v8439_v37  ;;  %v9256_v50 = vand.u32 4294901760, %v8497_v12  ;;  %4860 = vmatmul.mubr.f32.vlgmr.msra.gmra.mrb[36].mxu0 %v7712_v23 }
 0x272   :  { %v4904_v15 = vsub.f32 %v8424_v20, %v9253_v57  ;;  %6407 = vmatprep.subr.bf16.mxu0 %v6406_v49  ;;  %v4916_v51 = vsub.f32 %v8495_v55, %v9254_v19  ;;  %v9257_v18 = vand.u32 4294901760, %v8455_v26  ;;  %v9258_v29 = vand.u32 4294901760, %v8472_v9  ;;  %4865 = vmatprep.mubr.f32.mxu0 %v9154_v62 }
 0x273   :  { %v5600_v38 = vsub.f32 %v8439_v37, %v9255_v8  ;;  %v5612_v10 = vsub.f32 %v8497_v12, %v9256_v50  ;;  %v6502_v42 = vpack.c.bf16 %v5589_v58, %v5577_v40  ;;  %v9259_v49 = vand.u32 4294901760, %v8460_v36  ;;  %6409 = vmatpush1.bf16.msra.mxu0 %v6408_v11  ;;  %5556 = vmatmul.mubr.f32.vlgmr.msra.gmra.mrb[36].mxu1 %v7712_v23 }
 0x274   :  { %v6412_v0 = vpack.c.bf16 %v9258_v29, %v9257_v18  ;;  %v4905_v57 = vand.u32 4294901760, %v4904_v15  ;;  %v9260_v44 = vand.u32 4294901760, %v8484_v33  ;;  %v9261_v19 = vand.u32 4294901760, %v8514_v54  ;;  %5561 = vmatprep.mubr.f32.mxu1 %v9154_v62 }
 0x275   :  { %v4917_v26 = vand.u32 4294901760, %v4916_v51  ;;  %v5601_v50 = vand.u32 4294901760, %v5600_v38  ;;  %v5613_v9 = vand.u32 4294901760, %v5612_v10  ;;  %v9262_v58 = vand.u32 4294901760, %v8580_v3  ;;  %6503 = vmatprep.subr.bf16.mxu1 %v6502_v42  ;;  %4871 = vmatmul.mubr.f32.gmra.mrb[38].mxu0 %v7735_v43 }
 0x276   :  { %v6508_v24 = vpack.c.bf16 %v9260_v44, %v9259_v49  ;;  %v4928_v8 = vsub.f32 %v8514_v54, %v9261_v19  ;;  %v9263_v36 = vand.u32 4294901760, %v8517_v41  ;;  %v9264_v18 = vand.u32 4294901760, %v8582_v47  ;;  %6505 = vmatpush1.bf16.msra.mxu1 %v6504_v56  ;;  %5021 = vmatprep.mubr.f32.mxu0 %v9154_v62 }
 0x277   :  { %v4940_v40 = vsub.f32 %v8580_v3, %v9262_v58  ;;  %v9265_v11 = vand.u32 4294901760, %v8526_v35  ;;  %v9266_v23 = vand.u32 4294901760, %v8563_v61  ;;  %v6410_v38 = vpack.c.bf16 %v4917_v26, %v4905_v57  ;;  %5567 = vmatmul.mubr.f32.gmra.mrb[38].mxu1 %v7735_v43 }
 0x278   :  { %v4929_v15 = vand.u32 4294901760, %v4928_v8  ;;  %v5624_v33 = vsub.f32 %v8517_v41, %v9263_v36  ;;  %v5636_v29 = vsub.f32 %v8582_v47, %v9264_v18  ;;  %v6506_v10 = vpack.c.bf16 %v5613_v9, %v5601_v50  ;;  %5717 = vmatprep.mubr.f32.mxu1 %v9154_v62 }
 0x279   :  { %v6416_v51 = vpack.c.bf16 %v9266_v23, %v9265_v11  ;;  %v4941_v42 = vand.u32 4294901760, %v4940_v40  ;;  %v9267_v49 = vand.u32 4294901760, %v8541_v4  ;;  %v9268_v44 = vand.u32 4294901760, %v8576_v22  ;;  %6411 = vmatprep.subr.bf16.mxu0 %v6410_v38 }
 0x27a   :  { %v5625_v8 = vand.u32 4294901760, %v5624_v33  ;;  %v5637_v58 = vand.u32 4294901760, %v5636_v29  ;;  %v9269_v35 = vand.u32 4294901760, %v8592_v21  ;;  %v9270_v36 = vand.u32 4294901760, %v8650_v46  ;;  %6507 = vmatprep.subr.bf16.mxu1 %v6506_v10  ;;  %6413 = vmatpush1.bf16.msra.mxu0 %v6412_v0 }
 0x27b   :  { %v6512_v19 = vpack.c.bf16 %v9268_v44, %v9267_v49  ;;  %v5655_v57 = vand.u32 4294901760, %v8624_v17  ;;  %v6414_v4 = vpack.c.bf16 %v4941_v42, %v4929_v15  ;;  %v9271_v22 = vand.u32 4294901760, %v8595_v25  ;;  %6509 = vmatpush1.bf16.msra.mxu1 %v6508_v24 }
 0x27c   :  { %v4952_v61 = vsub.f32 %v8592_v21, %v9269_v35  ;;  %v4964_v56 = vsub.f32 %v8650_v46, %v9270_v36  ;;  %v9272_v50 = vand.u32 4294901760, %v8655_v16  ;;  %v6510_v40 = vpack.c.bf16 %v5637_v58, %v5625_v8 }
 0x27d   :  { %v5648_v26 = vsub.f32 %v8595_v25, %v9271_v22  ;;  %v9273_v29 = vand.u32 4294901760, %v8609_v1  ;;  %v9274_v11 = vand.u32 4294901760, %v8642_v63  ;;  %6415 = vmatprep.subr.bf16.mxu0 %v6414_v4  ;;  %v6516_v38 = vpack.c.bf16 %v5667_v30, %v5655_v57 }
 0x27e   :  { %v5660_v9 = vsub.f32 %v8655_v16, %v9272_v50  ;;  %v4953_v33 = vand.u32 4294901760, %v4952_v61  ;;  %v4965_v18 = vand.u32 4294901760, %v4964_v56  ;;  %v6422_v10 = vpack.c.bf16 %v8386_v27, %v8359_v6  ;;  %6511 = vmatprep.subr.bf16.mxu1 %v6510_v40  ;;  %6417 = vmatpush1.bf16.msra.mxu0 %v6416_v51 }
 0x27f   :  { %v6420_v17 = vpack.c.bf16 %v9274_v11, %v9273_v29  ;;  %v5649_v15 = vand.u32 4294901760, %v5648_v26  ;;  %v6518_v42 = vpack.c.bf16 %v8392_v32, %v8362_v39  ;;  %v6426_v63 = vpack.c.bf16 %v8495_v55, %v8424_v20  ;;  %6513 = vmatpush1.bf16.msra.mxu1 %v6512_v19 }
 0x280   :  { %v5661_v23 = vand.u32 4294901760, %v5660_v9  ;;  %v6418_v0 = vpack.c.bf16 %v4965_v18, %v4953_v33  ;;  %v6522_v43 = vpack.c.bf16 %v8497_v12, %v8439_v37  ;;  %v6430_v30 = vpack.c.bf16 %v8580_v3, %v8514_v54 }
 0x281   :  { %v6526_v24 = vpack.c.bf16 %v8582_v47, %v8517_v41  ;;  %v6434_v49 = vpack.c.bf16 %v8650_v46, %v8592_v21  ;;  %v6530_v44 = vpack.c.bf16 %v8655_v16, %v8595_v25  ;;  %v9275_v8 = vand.u32 4294901760, %v8359_v6 }
 0x282   :  { %v6514_v1 = vpack.c.bf16 %v5661_v23, %v5649_v15  ;;  %v9276_v58 = vand.u32 4294901760, %v8386_v27  ;;  %v9277_v61 = vand.u32 4294901760, %v8362_v39  ;;  %v9278_v36 = vand.u32 4294901760, %v8392_v32  ;;  %6419 = vmatprep.subr.bf16.mxu0 %v6418_v0 }
 0x283   :  { %v9279_v51 = vand.u32 4294901760, %v8354_v2  ;;  %v9280_v57 = vand.u32 4294901760, %v8379_v60  ;;  %v9281_v6 = vand.u32 4294901760, %v8356_v7  ;;  %v9282_v27 = vand.u32 4294901760, %v8384_v13  ;;  %6421 = vmatpush1.bf16.msra.mxu0 %v6420_v17 }
 0x284   :  { %v8770_v35 = vpack.c.bf16 %v9276_v58, %v9275_v8  ;;  %v8776_v56 = vpack.c.bf16 %v9278_v36, %v9277_v61  ;;  %v9283_v39 = vand.u32 4294901760, %v8424_v20  ;;  %v9284_v32 = vand.u32 4294901760, %v8495_v55  ;;  %6515 = vmatprep.subr.bf16.mxu1 %v6514_v1  ;;  %v9295_v1 = vld [vmem:[#allocation12_spill] sm:$0xff]  ;;  %v9297_v58 = vld [vmem:[#allocation14_spill] sm:$0xff]  ;;  %6423 = vmatprep.subr.bf16.mxu0 %v6422_v10 }
 0x285   :  { %v8782_v4 = vpack.c.bf16 %v9280_v57, %v9279_v51  ;;  %v8788_v22 = vpack.c.bf16 %v9282_v27, %v9281_v6  ;;  %v9285_v19 = vand.u32 4294901760, %v8439_v37  ;;  %v9286_v50 = vand.u32 4294901760, %v8497_v12  ;;  %v9299_v51 = vld [vmem:[#allocation20_spill] sm:$0xff]  ;;  %v9301_v6 = vld [vmem:[#allocation25_spill] sm:$0xff]  ;;  %6517 = vmatpush1.bf16.msra.mxu1 %v6516_v38  ;;  %v9314_v38 = vld [vmem:[#allocation7_spill] sm:$0xff] }
 0x286   :  { %v8794_v26 = vpack.c.bf16 %v9284_v32, %v9283_v39  ;;  %v9287_v40 = vand.u32 4294901760, %v8419_v48  ;;  %v9288_v33 = vand.u32 4294901760, %v8432_v31  ;;  %v9289_v29 = vand.u32 4294901760, %v8421_v45  ;;  %6519 = vmatprep.subr.bf16.mxu1 %v6518_v42  ;;  %v9324_v42 = vld [vmem:[#allocation19_spill] sm:$0xff] }
 0x287   :  { %v8800_v9 = vpack.c.bf16 %v9286_v50, %v9285_v19  ;;  %v9290_v20 = vand.u32 4294901760, %v8441_v53  ;;  %v9291_v11 = vand.u32 4294901760, %v8514_v54  ;;  %v9292_v37 = vand.u32 4294901760, %v8580_v3 }
 0x288   :  { %v8806_v18 = vpack.c.bf16 %v9288_v33, %v9287_v40  ;;  %v9293_v12 = vand.u32 4294901760, %v8517_v41  ;;  %v9294_v23 = vand.u32 4294901760, %v8582_v47  ;;  %v9296_v8 = vand.u32 4294901760, %v9295_v1 }
 0x289   :  { %v8812_v55 = vpack.c.bf16 %v9290_v20, %v9289_v29  ;;  %v8818_v15 = vpack.c.bf16 %v9292_v37, %v9291_v11  ;;  %v9298_v61 = vand.u32 4294901760, %v9297_v58  ;;  %v9300_v57 = vand.u32 4294901760, %v9299_v51  ;;  %v9335_v20 = vld [vmem:[#allocation27_spill] sm:$0xff]  ;;  %v9336_v11 = vld [vmem:[#allocation28_spill] sm:$0xff] }
 0x28a   :  { %v8824_v0 = vpack.c.bf16 %v9294_v23, %v9293_v12  ;;  %v9302_v54 = vand.u32 4294901760, %v9301_v6  ;;  %v9303_v3 = vand.u32 4294901760, %v8592_v21  ;;  %v9304_v41 = vand.u32 4294901760, %v8650_v46  ;;  %v9337_v37 = vld [vmem:[#allocation8_spill] sm:$0xff]  ;;  %v9338_v12 = vld [vmem:[#allocation10_spill] sm:$0xff] }
 0x28b   :  { %v8830_v36 = vpack.c.bf16 %v9298_v61, %v9296_v8  ;;  %v9305_v47 = vand.u32 4294901760, %v8595_v25  ;;  %v9306_v32 = vand.u32 4294901760, %v8655_v16  ;;  %v9307_v50 = vand.u32 4294901760, %v8585_v5  ;;  %v9311_v25 = vld [vmem:[#allocation5_spill] sm:$0xff] }
 0x28c   :  { %v8836_v27 = vpack.c.bf16 %v9302_v54, %v9300_v57  ;;  %v8842_v39 = vpack.c.bf16 %v9304_v41, %v9303_v3  ;;  %v9308_v40 = vand.u32 4294901760, %v8614_v52  ;;  %v9309_v29 = vand.u32 4294901760, %v8590_v34  ;;  %5023 = vmatmul.mubr.f32.vlgmr.msra.gmra.mrb[36].mxu0 %v9311_v25  ;;  %5719 = vmatmul.mubr.f32.vlgmr.msra.gmra.mrb[36].mxu1 %v9311_v25 }
 0x28d   :  { %v8848_v19 = vpack.c.bf16 %v9306_v32, %v9305_v47  ;;  %v9310_v21 = vand.u32 4294901760, %v8637_v14  ;;  %v9312_v16 = vpack.c.bf16 %v8379_v60, %v8354_v2  ;;  %v9313_v17 = vpack.c.bf16 %v8384_v13, %v8356_v7  ;;  %5028 = vmatprep.mubr.f32.mxu0 %v9154_v62  ;;  %5724 = vmatprep.mubr.f32.mxu1 %v9154_v62 }
 0x28e   :  { %v8854_v33 = vpack.c.bf16 %v9308_v40, %v9307_v50  ;;  %v9315_v10 = vpack.c.bf16 %v8432_v31, %v8419_v48  ;;  %v9316_v2 = vpack.c.bf16 %v8441_v53, %v8421_v45  ;;  %v9317_v7 = vpack.c.bf16 %v9297_v58, %v9295_v1  ;;  %v9321_v31 = vld [vmem:[#allocation22_spill] sm:$0xff]  ;;  %v9322_v48 = vld [vmem:[#allocation11_spill] sm:$0xff] }
 0x28f   :  { %v8860_v46 = vpack.c.bf16 %v9310_v21, %v9309_v29  ;;  %6425 = vmatpush1.bf16.msra.mxu0 %v9312_v16  ;;  %6521 = vmatpush1.bf16.msra.mxu1 %v9313_v17  ;;  %v9318_v60 = vpack.c.bf16 %v9301_v6, %v9299_v51  ;;  %v9319_v13 = vpack.c.bf16 %v8614_v52, %v8585_v5  ;;  %v9323_v45 = vld [vmem:[#allocation6_spill] sm:$0xff]  ;;  %v9330_v52 = vld [vmem:[#allocation16_spill] sm:$0xff] }
 0x290   :  { %6427 = vmatprep.subr.bf16.mxu0 %v6426_v63  ;;  %6523 = vmatprep.subr.bf16.mxu1 %v6522_v43  ;;  %v9320_v53 = vpack.c.bf16 %v8637_v14, %v8590_v34  ;;  %v9325_v63 = vld [vmem:[#allocation17_spill] sm:$0xff]  ;;  %v9326_v43 = vld [vmem:[#allocation15_spill] sm:$0xff]  ;;  %v9327_v5 = vld [vmem:[#allocation18_spill] sm:$0xff] }
 0x291   :  { %5030 = vmatmul.mubr.f32.gmra.mrb[38].mxu0 %v9314_v38  ;;  %5726 = vmatmul.mubr.f32.gmra.mrb[38].mxu1 %v9314_v38  ;;  %v9328_v34 = vld [vmem:[#allocation9_spill] sm:$0xff] }
 0x292   :  { %5132 = vmatprep.mubr.f32.mxu0 %v9154_v62  ;;  %5828 = vmatprep.mubr.f32.mxu1 %v9154_v62  ;;  %v9329_v14 = vld [vmem:[#allocation13_spill] sm:$0xff] }
 0x293   :  { %6429 = vmatpush1.bf16.msra.mxu0 %v9315_v10  ;;  %6525 = vmatpush1.bf16.msra.mxu1 %v9316_v2 }
 0x294   :  { %6431 = vmatprep.subr.bf16.mxu0 %v6430_v30  ;;  %6527 = vmatprep.subr.bf16.mxu1 %v6526_v24  ;;  %v9331_v30 = vld [vmem:[#allocation21_spill] sm:$0xff]  ;;  %v9332_v24 = vld [vmem:[#allocation26_spill] sm:$0xff] }
 0x297   :  { %6433 = vmatpush1.bf16.msra.mxu0 %v9317_v7  ;;  %6529 = vmatpush1.bf16.msra.mxu1 %v9318_v60 }
 0x298   :  { %6435 = vmatprep.subr.bf16.mxu0 %v6434_v49  ;;  %6531 = vmatprep.subr.bf16.mxu1 %v6530_v44  ;;  %v9333_v49 = vld [vmem:[#allocation23_spill] sm:$0xff]  ;;  %v9334_v44 = vld [vmem:[#allocation24_spill] sm:$0xff] }
 0x29b   :  { %6437 = vmatpush1.bf16.msra.mxu0 %v9319_v13  ;;  %6533 = vmatpush1.bf16.msra.mxu1 %v9320_v53 }
 0x29c   :  { %6439 = vmatprep.subr.bf16.mxu0 %v9321_v31  ;;  %6535 = vmatprep.subr.bf16.mxu1 %v9322_v48 }
 0x29e   :  { %5135 = vmatmul.mubr.f32.vlgmr.msra.gmra.mrb[36].mxu0 %v9323_v45  ;;  %5831 = vmatmul.mubr.f32.vlgmr.msra.gmra.mrb[36].mxu1 %v9323_v45 }
 0x29f   :  { %6441 = vmatpush1.bf16.msra.mxu0 %v9324_v42  ;;  %6537 = vmatpush1.bf16.msra.mxu1 %v9325_v63 }
 0x2a0   :  { %6443 = vmatprep.subr.bf16.mxu0 %v9326_v43  ;;  %6539 = vmatprep.subr.bf16.mxu1 %v9327_v5 }
 0x2a1   :  { %5140 = vmatprep.mubr.f32.mxu0 %v9154_v62  ;;  %5836 = vmatprep.mubr.f32.mxu1 %v9154_v62 }
 0x2a2   :  { %5143 = vmatmul.mubr.f32.gmra.mrb[38].mxu0 %v9328_v34  ;;  %5839 = vmatmul.mubr.f32.gmra.mrb[38].mxu1 %v9328_v34 }
 0x2a3   :  { %6445 = vmatpush1.bf16.msra.mxu0 %v9329_v14  ;;  %6541 = vmatpush1.bf16.msra.mxu1 %v9330_v52 }
 0x2a4   :  { %6447 = vmatprep.subr.bf16.mxu0 %v9331_v30  ;;  %6543 = vmatprep.subr.bf16.mxu1 %v9332_v24 }
 0x2a5   :  { %5229 = vmatprep.mubr.f32.mxu0 %v9154_v62  ;;  %5925 = vmatprep.mubr.f32.mxu1 %v9154_v62 }
 0x2a7   :  { %6449 = vmatpush1.bf16.msra.mxu0 %v9333_v49  ;;  %6545 = vmatpush1.bf16.msra.mxu1 %v9334_v44 }
 0x2a8   :  { %6451 = vmatprep.subr.bf16.mxu0 %v9335_v20  ;;  %6547 = vmatprep.subr.bf16.mxu1 %v9336_v11 }
 0x2ab   :  { %6453 = vmatpush1.bf16.msra.mxu0 %v8612_v28  ;;  %6549 = vmatpush1.bf16.msra.mxu1 %v8635_v59 }
 0x2ac   :  { %6455 = vmatprep.subr.bf16.mxu0 %v8770_v35  ;;  %6551 = vmatprep.subr.bf16.mxu1 %v8776_v56 }
 0x2ae   :  { %5233 = vmatmul.mubr.f32.vlgmr.msra.gmra.mrb[36].mxu0 %v9337_v37  ;;  %5929 = vmatmul.mubr.f32.vlgmr.msra.gmra.mrb[36].mxu1 %v9337_v37 }
 0x2af   :  { %6457 = vmatpush1.bf16.msra.mxu0 %v8782_v4  ;;  %6553 = vmatpush1.bf16.msra.mxu1 %v8788_v22 }
 0x2b0   :  { %6459 = vmatprep.subr.bf16.mxu0 %v8794_v26  ;;  %6555 = vmatprep.subr.bf16.mxu1 %v8800_v9 }
 0x2b1   :  { %5238 = vmatprep.mubr.f32.mxu0 %v9154_v62  ;;  %5934 = vmatprep.mubr.f32.mxu1 %v9154_v62 }
 0x2b2   :  { %5242 = vmatmul.mubr.f32.gmra.mrb[38].mxu0 %v9338_v12  ;;  %5938 = vmatmul.mubr.f32.gmra.mrb[38].mxu1 %v9338_v12 }
 0x2b3   :  { %6461 = vmatpush1.bf16.msra.mxu0 %v8806_v18  ;;  %6557 = vmatpush1.bf16.msra.mxu1 %v8812_v55 }
 0x2b4   :  { %6463 = vmatprep.subr.bf16.mxu0 %v8818_v15  ;;  %6559 = vmatprep.subr.bf16.mxu1 %v8824_v0 }
 0x2b5   :  { %5360 = vmatprep.mubr.f32.mxu0 %v9154_v62  ;;  %6056 = vmatprep.mubr.f32.mxu1 %v9154_v62 }
 0x2b7   :  { %6465 = vmatpush1.bf16.msra.mxu0 %v8830_v36  ;;  %6561 = vmatpush1.bf16.msra.mxu1 %v8836_v27 }
 0x2b8   :  { %6467 = vmatprep.subr.bf16.mxu0 %v8842_v39  ;;  %6563 = vmatprep.subr.bf16.mxu1 %v8848_v19 }
 0x2bb   :  { %6469 = vmatpush1.bf16.msra.mxu0 %v8854_v33  ;;  %6565 = vmatpush1.bf16.msra.mxu1 %v8860_v46 }
 0x2bc   :  { %6471 = vmatprep.subr.bf16.mxu0 %v9321_v31  ;;  %6567 = vmatprep.subr.bf16.mxu1 %v9322_v48 }
 0x2be   :  { %5362 = vmatmul.mubr.f32.vlgmr.msra.gmra.mrb[36].mxu0 %v9311_v25  ;;  %6058 = vmatmul.mubr.f32.vlgmr.msra.gmra.mrb[36].mxu1 %v9311_v25 }
 0x2bf   :  { %6473 = vmatpush1.bf16.msra.mxu0 %v9324_v42  ;;  %6569 = vmatpush1.bf16.msra.mxu1 %v9325_v63 }
 0x2c0   :  { %6475 = vmatprep.subr.bf16.mxu0 %v9326_v43  ;;  %6571 = vmatprep.subr.bf16.mxu1 %v9327_v5 }
 0x2c1   :  { %5367 = vmatprep.mubr.f32.mxu0 %v9154_v62  ;;  %6063 = vmatprep.mubr.f32.mxu1 %v9154_v62 }
 0x2c2   :  { %5369 = vmatmul.mubr.f32.gmra.mrb[38].mxu0 %v9314_v38  ;;  %6065 = vmatmul.mubr.f32.gmra.mrb[38].mxu1 %v9314_v38 }
 0x2c3   :  { %6477 = vmatpush1.bf16.msra.mxu0 %v9329_v14  ;;  %6573 = vmatpush1.bf16.msra.mxu1 %v9330_v52 }
 0x2c4   :  { %6479 = vmatprep.subr.bf16.mxu0 %v9331_v30  ;;  %6575 = vmatprep.subr.bf16.mxu1 %v9332_v24 }
 0x2c5   :  { %5455 = vmatprep.mubr.f32.mxu0 %v9154_v62  ;;  %6151 = vmatprep.mubr.f32.mxu1 %v9154_v62 }
 0x2c7   :  { %6481 = vmatpush1.bf16.msra.mxu0 %v9333_v49  ;;  %6577 = vmatpush1.bf16.msra.mxu1 %v9334_v44 }
 0x2c8   :  { %6483 = vmatprep.subr.bf16.mxu0 %v9335_v20  ;;  %6579 = vmatprep.subr.bf16.mxu1 %v9336_v11 }
 0x2cb   :  { %6485 = vmatpush1.bf16.msra.mxu0 %v8612_v28  ;;  %6581 = vmatpush1.bf16.msra.mxu1 %v8635_v59 }
 0x2ce   :  { %5457 = vmatmul.mubr.f32.vlgmr.msra.gmra.mrb[36].mxu0 %v9311_v25  ;;  %6153 = vmatmul.mubr.f32.vlgmr.msra.gmra.mrb[36].mxu1 %v9311_v25 }
 0x2cf   :  { %5462 = vmatprep.mubr.f32.mxu0 %v9154_v62  ;;  %6158 = vmatprep.mubr.f32.mxu1 %v9154_v62 }
 0x2d2   :  { %5464 = vmatmul.mubr.f32.gmra.mrb[38].mxu0 %v9314_v38  ;;  %6160 = vmatmul.mubr.f32.gmra.mrb[38].mxu1 %v9314_v38 }
 0x2e1   :  { %v4066_v35 = vpop.f32.mrb[32].mxu0 }
 0x2e2   :  { %6166 = vst [vmem:[#allocation2] sm:$0xff] %v4066_v35  ;;  %v4762_v56 = vpop.f32.mrb[32].mxu1  ;;  %v4068_v4 = vpop.f32.mrb[33].mxu0 }
 0x2e3   :  { %6168 = vst [vmem:[#allocation2 + $0x10] sm:$0xff] %v4762_v56  ;;  %6167 = vst [vmem:[#allocation2 + $0x8] sm:$0xff] %v4068_v4  ;;  %v4764_v28 = vpop.f32.mrb[33].mxu1 }
 0x2e4   :  { %6169 = vst [vmem:[#allocation2 + $0x18] sm:$0xff] %v4764_v28 }
 0x2e5   :  { %v4073_v59 = vpop.f32.mrb[34].mxu0 }
 0x2e6   :  { %6174 = vst [vmem:[#allocation2 + $0x40] sm:$0xff] %v4073_v59  ;;  %v4769_v22 = vpop.f32.mrb[34].mxu1  ;;  %v4075_v26 = vpop.f32.mrb[35].mxu0 }
 0x2e7   :  { %6176 = vst [vmem:[#allocation2 + $0x50] sm:$0xff] %v4769_v22  ;;  %6175 = vst [vmem:[#allocation2 + $0x48] sm:$0xff] %v4075_v26  ;;  %v4771_v9 = vpop.f32.mrb[35].mxu1 }
 0x2e8   :  { %6177 = vst [vmem:[#allocation2 + $0x58] sm:$0xff] %v4771_v9 }
 0x3a1   :  { %v5458_v62 = vpop.f32.mrb[36].mxu0  ;;  %v6154_v18 = vpop.f32.mrb[36].mxu1 }
 0x3a2   :  { %6170 = vst [vmem:[#allocation2 + $0x20] sm:$0xff] %v5458_v62  ;;  %v5460_v55 = vpop.f32.mrb[37].mxu0  ;;  %6172 = vst [vmem:[#allocation2 + $0x30] sm:$0xff] %v6154_v18  ;;  %v6156_v15 = vpop.f32.mrb[37].mxu1 }
 0x3a3   :  { %6171 = vst [vmem:[#allocation2 + $0x28] sm:$0xff] %v5460_v55  ;;  %6173 = vst [vmem:[#allocation2 + $0x38] sm:$0xff] %v6156_v15 }
 0x3a5   :  { %v5465_v23 = vpop.f32.mrb[38].mxu0  ;;  %v6161_v0 = vpop.f32.mrb[38].mxu1 }
 0x3a6   :  { %6178 = vst [vmem:[#allocation2 + $0x60] sm:$0xff] %v5465_v23  ;;  %v5467_v1 = vpop.f32.mrb[39].mxu0  ;;  %6180 = vst [vmem:[#allocation2 + $0x70] sm:$0xff] %v6161_v0  ;;  %v6163_v8 = vpop.f32.mrb[39].mxu1 }
 0x3a7   :  { %6179 = vst [vmem:[#allocation2 + $0x68] sm:$0xff] %v5467_v1  ;;  %6181 = vst [vmem:[#allocation2 + $0x78] sm:$0xff] %v6163_v8 }
 0x3a8   :  { %7001 = shalt.err (!%p6998_p4)
}
 0x3a9   :  { %s7002_s15 = scalar_lea.hbm %s8987_s3, 2048 }
 0x3aa   :  { %p7003_p5 = scmp.ne.s32.totalorder %s8987_s3, %s7002_s15  ;;  %p7006_p6 = scmp.lt.u32.totalorder %s7002_s15, %s8987_s3 }
 0x3ac   :  { %p7008_p7 = pnand %p7006_p6, %p7003_p5 }
 0x3ae   :  { %7011 = shalt.err (!%p7008_p7)
}
 0x3af   :  { %s7016_s20 = smov 1024   ;;  %s7017_s21 = smov 64  }
 0x3b0   :  { %6193 = dma.vmem_to_hbm [thread:$0]  %s6188_s11, 2048, %s8987_s3, [#allocation3], %s7016_s20, %s7016_s20, %s7017_s21  }
 0x3b1   :  { %7012 = dma.done.wait [#allocation3], 2048  }
 0x3b2   :  { %7013 = vsyncadd [#allocation3], 4294965248 }
 0x3b3   :  { %6197 = vsyncpa [#allocation3], 1 }

</bundles_post_ra>
